<compile_context>
chip_gen: v6e
topology: v6e:2x2x1
jax: 0.10.0
libtpu: 0.0.40
codegen_flags: <defaults>
</compile_context>

<pallas_src>
import functools

import jax
import jax.numpy as jnp
from jax import lax
from jax.experimental import pallas as pl
from jax.experimental.pallas import tpu as pltpu  # noqa: F401  (kept per convention)


# ------------------------------- kernel ------------------------------------


def _seq2seq_kernel(x_ref, trg_ref,
                    tab_hour_ref, tab_week_ref, w_ie_cont_ref, b_e_ref,
                    w_he_ref,
                    w_id_ref, w_hd_ref, w_hd_eff_ref,
                    b_d_ref, b_d_eff_ref,
                    w_o_ref, b_o_ref,
                    out_ref,
                    *, batch, hid_dim, is_train):
    f32 = jnp.float32
    bf16 = jnp.bfloat16
    B = batch
    H = hid_dim
    LBe, F = x_ref.shape           # (L_enc*B, n_cont+2), time-major, batch-minor
    L_enc = LBe // B
    LBd, out_dim = out_ref.shape   # (L_dec*B, out_dim)
    L_dec = LBd // B
    n_hour = tab_hour_ref.shape[0]
    n_week = tab_week_ref.shape[0]

    def gates_to_hc(gates, c_prev):
        # Two full-width EUP pushes over (B, 4H); the H-lane slices afterwards
        # are static and cheap.
        sg = jax.nn.sigmoid(gates)
        th = jnp.tanh(gates)
        i = sg[:, 0 * H:1 * H]
        f = sg[:, 1 * H:2 * H]
        g = th[:, 2 * H:3 * H]
        o = sg[:, 3 * H:4 * H]
        c_new = f * c_prev + i * g
        h_new = o * jnp.tanh(c_new)
        return h_new, c_new

    # ---------------- encoder input projection -------------------------------
    # Embedding lookups are folded into the projection: one-hot(idx) @ table,
    # where table = emb_table * w_ie_row was precomputed in the wrapper.
    # All three matmuls are off the recurrence's critical path.
    x = x_ref[...]
    hour_i = x[:, F - 1:F].astype(jnp.int32)               # (L_enc*B, 1)
    week_i = x[:, F - 2:F - 1].astype(jnp.int32)
    oh_hour = (lax.broadcasted_iota(jnp.int32, (LBe, n_hour), 1) == hour_i).astype(bf16)
    oh_week = (lax.broadcasted_iota(jnp.int32, (LBe, n_week), 1) == week_i).astype(bf16)
    x_proj = (jnp.dot(oh_hour, tab_hour_ref[...], preferred_element_type=f32)
              + jnp.dot(oh_week, tab_week_ref[...], preferred_element_type=f32)
              + jnp.dot(x[:, :F - 2], w_ie_cont_ref[...], preferred_element_type=f32)
              + b_e_ref[...])                              # (L_enc*B, 4H) f32

    # ---------------- encoder recurrence (unrolled) ---------------------------
    w_he = w_he_ref[...]
    h = jnp.zeros((B, H), f32)      # PyTorch default zero initial state
    c = jnp.zeros((B, H), f32)
    for t in range(L_enc):
        gates = x_proj[t * B:(t + 1) * B, :] + jnp.dot(
            h.astype(bf16), w_he, preferred_element_type=f32)
        h, c = gates_to_hc(gates, c)

    # ---------------- decoder (initial state = final encoder state) ----------
    w_hd = w_hd_ref[...]
    b_d_b = jnp.broadcast_to(b_d_ref[...], (B, 4 * H))
    hs = []

    if is_train:
        # Teacher forcing: hoist the input projection for every decoder step.
        # Step 0 uses a zero decoder input, i.e. bias-only gates (compile-time
        # branch, no per-step select); d_proj row block 0 is simply never read.
        d_proj = jnp.dot(trg_ref[...], w_id_ref[...],
                         preferred_element_type=f32) + b_d_ref[...]
        for t in range(L_dec):
            xin = b_d_b if t == 0 else d_proj[t * B:(t + 1) * B, :]
            gates = xin + jnp.dot(h.astype(bf16), w_hd, preferred_element_type=f32)
            h, c = gates_to_hc(gates, c)
            hs.append(h)
    else:
        # Autoregressive: the pred -> w_id dependency is folded into the
        # recurrent weights (w_hd_eff = w_hd + w_o @ w_id), so every step is a
        # single h @ W MXU push.  Step 0 has a zero input -> plain w_hd / b_d.
        w_hd_eff = w_hd_eff_ref[...]
        b_d_eff_b = jnp.broadcast_to(b_d_eff_ref[...], (B, 4 * H))
        for t in range(L_dec):
            if t == 0:
                gates = jnp.dot(h.astype(bf16), w_hd,
                                preferred_element_type=f32) + b_d_b
            else:
                gates = jnp.dot(h.astype(bf16), w_hd_eff,
                                preferred_element_type=f32) + b_d_eff_b
            h, c = gates_to_hc(gates, c)
            hs.append(h)

    # ---------------- batched output projection + single writeback -----------
    h_all = jnp.concatenate(hs, axis=0).astype(bf16)       # (L_dec*B, H)
    out = jnp.dot(h_all, w_o_ref[...], preferred_element_type=f32) + b_o_ref[...]
    out_ref[...] = out.astype(out_ref.dtype)


# ------------------------------ wrapper -------------------------------------


def seq2seq_forward(x, trg, params, is_train):
    f32 = jnp.float32
    bf16 = jnp.bfloat16

    L_enc, B, F = x.shape
    L_dec, _, in2 = trg.shape
    H = params["w_he"].shape[0]
    out_dim = params["w_o"].shape[1]
    w_ie = params["w_ie"].astype(f32)

    # Embedding tables folded into the encoder input projection (exact f32
    # outer products: emb dim is 1, so table @ w_ie_row == emb * row).
    tab_hour = (params["emb_hour"].astype(f32) * w_ie[0:1, :]).astype(bf16)   # (24, 4H)
    tab_week = (params["emb_week"].astype(f32) * w_ie[1:2, :]).astype(bf16)   # (7, 4H)
    w_ie_cont = w_ie[2:, :].astype(bf16)                                      # (F-2, 4H)

    # Autoregressive fold (f32, exact): pred_t = h_t @ w_o + b_o  =>
    #   gates_{t+1} = h_t @ (w_hd + w_o @ w_id) + (b_d + b_o @ w_id)
    w_hd_eff = params["w_hd"] + jnp.dot(params["w_o"], params["w_id"],
                                        precision=lax.Precision.HIGHEST)
    b_d_eff = params["b_d"] + jnp.dot(params["b_o"], params["w_id"],
                                      precision=lax.Precision.HIGHEST)

    # Flatten time/batch (time-major, batch-minor) and pre-cast matmul operands
    # to bf16; biases stay f32.
    x_flat = x.astype(bf16).reshape(L_enc * B, F)
    trg_flat = trg.astype(bf16).reshape(L_dec * B, in2)

    args = (x_flat, trg_flat,
            tab_hour, tab_week, w_ie_cont, params["b_e"].astype(f32),
            params["w_he"].astype(bf16),
            params["w_id"].astype(bf16), params["w_hd"].astype(bf16),
            w_hd_eff.astype(bf16),
            params["b_d"].astype(f32), b_d_eff.astype(f32),
            params["w_o"].astype(bf16), params["b_o"].astype(f32))

    def full_spec(a):
        return pl.BlockSpec(a.shape, lambda: (0,) * a.ndim)

    kernel = functools.partial(_seq2seq_kernel, batch=B, hid_dim=H,
                               is_train=bool(is_train))

    # Total resident data is well under 1 MiB -> full-array residency, no grid.
    # For large B (many independent sequences), tile the batch axis with a grid
    # + dimension_semantics=("parallel",) to use both v7x TensorCores.
    out2d = pl.pallas_call(
        kernel,
        out_shape=jax.ShapeDtypeStruct((L_dec * B, out_dim), jnp.float32),
        in_specs=[full_spec(a) for a in args],
        out_specs=pl.BlockSpec((L_dec * B, out_dim), lambda: (0, 0)),
    )(*args)
    return out2d.reshape(L_dec, B, out_dim)


# --------------------------- pure-JAX reference -----------------------------


def seq2seq_reference(x, trg, params, is_train):
    hour_idx = x[:, :, -1].astype(jnp.int32)
    week_idx = x[:, :, -2].astype(jnp.int32)
    x1 = params["emb_hour"][hour_idx]
    x2 = params["emb_week"][week_idx]
    x_input = jnp.concatenate([x1, x2, x[:, :, :-2]], axis=2)

    hid = params["w_he"].shape[0]
    B = x_input.shape[1]
    out_dim = params["w_o"].shape[1]

    def cell(x_t, h, c, wi, wh, b):
        gates = (jnp.dot(x_t, wi, precision=lax.Precision.HIGHEST)
                 + jnp.dot(h, wh, precision=lax.Precision.HIGHEST) + b)
        i = jax.nn.sigmoid(gates[:, :hid])
        f = jax.nn.sigmoid(gates[:, hid:2 * hid])
        g = jnp.tanh(gates[:, 2 * hid:3 * hid])
        o = jax.nn.sigmoid(gates[:, 3 * hid:])
        c = f * c + i * g
        h = o * jnp.tanh(c)
        return h, c

    h = jnp.zeros((B, hid), jnp.float32)
    c = jnp.zeros((B, hid), jnp.float32)
    for t in range(x_input.shape[0]):
        h, c = cell(x_input[t], h, c, params["w_ie"], params["w_he"], params["b_e"])

    outs = []
    pred = jnp.zeros((B, out_dim), jnp.float32)
    for t in range(trg.shape[0]):
        if t == 0:
            d_in = jnp.zeros_like(trg[0])
        else:
            d_in = trg[t] if is_train else pred
        h, c = cell(d_in, h, c, params["w_id"], params["w_hd"], params["b_d"])
        pred = jnp.dot(h, params["w_o"], precision=lax.Precision.HIGHEST) + params["b_o"]
        outs.append(pred)
    return jnp.stack(outs, axis=0)


# -------------------------------- main --------------------------------------


def init_params(key, input_dim1, input_dim2, hid_dim, output_dim):
    ks = jax.random.split(key, 10)
    s = 1.0 / jnp.sqrt(hid_dim)

    def u(k, shape, scale):
        return jax.random.uniform(k, shape, jnp.float32, -scale, scale)

    return {
        "emb_hour": jax.random.normal(ks[0], (24, 1), jnp.float32),
        "emb_week": jax.random.normal(ks[1], (7, 1), jnp.float32),
        # encoder LSTM (weights transposed: (in, 4H) / (H, 4H)); b = b_ih + b_hh
        "w_ie": u(ks[2], (input_dim1, 4 * hid_dim), s),
        "w_he": u(ks[3], (hid_dim, 4 * hid_dim), s),
        "b_e": u(ks[4], (1, 4 * hid_dim), s),
        # decoder LSTM
        "w_id": u(ks[5], (input_dim2, 4 * hid_dim), s),
        "w_hd": u(ks[6], (hid_dim, 4 * hid_dim), s),
        "b_d": u(ks[7], (1, 4 * hid_dim), s),
        # output Linear
        "w_o": u(ks[8], (hid_dim, output_dim), s),
        "b_o": u(ks[9], (1, output_dim), s),
    }


if __name__ == "__main__":
    L_enc, L_dec, B = 8, 6, 8     # B = 8 keeps time/batch collapses tile-trivial
    n_cont = 4                    # continuous features in x
    input_dim1 = n_cont + 2       # 1 hour emb + 1 week emb + continuous
    input_dim2 = 2                # decoder input dim (== output_dim, per module)
    hid_dim, output_dim = 32, 2

    key = jax.random.PRNGKey(0)
    k_x, k_w, k_h, k_t, k_p = jax.random.split(key, 5)

    cont = jax.random.normal(k_x, (L_enc, B, n_cont), jnp.float32)
    week = jax.random.randint(k_w, (L_enc, B, 1), 0, 7).astype(jnp.float32)
    hour = jax.random.randint(k_h, (L_enc, B, 1), 0, 24).astype(jnp.float32)
    x = jnp.concatenate([cont, week, hour], axis=2)          # (L_enc, B, 6)
    trg = jax.random.normal(k_t, (L_dec, B, input_dim2), jnp.float32)

    params = init_params(k_p, input_dim1, input_dim2, hid_dim, output_dim)

    fwd = jax.jit(seq2seq_forward, static_argnames=("is_train",))

    ok = True
    for is_train in (True, False):
        out = fwd(x, trg, params, is_train=is_train)
        out = jax.block_until_ready(out)
        ref = seq2seq_reference(x, trg, params, is_train)
        err = float(jnp.max(jnp.abs(out - ref)))
        # Kernel matmuls run on the bf16 MXU path (+ the w_hd_eff fold adds one
        # extra bf16 rounding of the recurrent weights); reference is full-f32,
        # so allow a small quantization tolerance.
        if out.shape != (L_dec, B, output_dim) or not err < 3e-2:
            ok = False
            print(f"mismatch (is_train={is_train}): max_abs_err={err}, shape={out.shape}")

    if ok:
        print("KERNEL_OK")
</pallas_src>

<mosaic_0001>
module attributes {stable_mosaic.version = 11 : i64} {
  func.func @_seq2seq_kernel(%arg0: memref<64x6xbf16, #tpu.memory_space<vmem>>, %arg1: memref<48x2xbf16, #tpu.memory_space<vmem>>, %arg2: memref<24x128xbf16, #tpu.memory_space<vmem>>, %arg3: memref<7x128xbf16, #tpu.memory_space<vmem>>, %arg4: memref<4x128xbf16, #tpu.memory_space<vmem>>, %arg5: memref<1x128xf32, #tpu.memory_space<vmem>>, %arg6: memref<32x128xbf16, #tpu.memory_space<vmem>>, %arg7: memref<2x128xbf16, #tpu.memory_space<vmem>>, %arg8: memref<32x128xbf16, #tpu.memory_space<vmem>>, %arg9: memref<32x128xbf16, #tpu.memory_space<vmem>>, %arg10: memref<1x128xf32, #tpu.memory_space<vmem>>, %arg11: memref<1x128xf32, #tpu.memory_space<vmem>>, %arg12: memref<32x2xbf16, #tpu.memory_space<vmem>>, %arg13: memref<1x2xf32, #tpu.memory_space<vmem>>, %arg14: memref<48x2xf32, #tpu.memory_space<vmem>>) attributes {dimension_semantics = [], scalar_prefetch = 0 : i64, scratch_operands = 0 : i64, tpu.core_type = #tpu.core_type<tc>} {
    %c0 = arith.constant 0 : index
    %c0_0 = arith.constant 0 : index
    %0 = vector.load %arg0[%c0, %c0_0] : memref<64x6xbf16, #tpu.memory_space<vmem>>, vector<64x6xbf16>
    %1 = vector.extract_strided_slice %0 {offsets = [0, 5], sizes = [64, 1], strides = [1, 1]} : vector<64x6xbf16> to vector<64x1xbf16>
    %2 = arith.fptosi %1 : vector<64x1xbf16> to vector<64x1xi32>
    %3 = vector.extract_strided_slice %0 {offsets = [0, 4], sizes = [64, 1], strides = [1, 1]} : vector<64x6xbf16> to vector<64x1xbf16>
    %4 = arith.fptosi %3 : vector<64x1xbf16> to vector<64x1xi32>
    %5 = tpu.iota {dimensions = array<i32: 1>} : vector<64x24xi32>
    %6 = vector.broadcast %2 : vector<64x1xi32> to vector<64x24xi32>
    %7 = arith.cmpi eq, %5, %6 : vector<64x24xi32>
    %8 = arith.extui %7 : vector<64x24xi1> to vector<64x24xi32>
    %9 = arith.sitofp %8 : vector<64x24xi32> to vector<64x24xf32>
    %10 = arith.truncf %9 : vector<64x24xf32> to vector<64x24xbf16>
    %11 = tpu.iota {dimensions = array<i32: 1>} : vector<64x7xi32>
    %12 = vector.broadcast %4 : vector<64x1xi32> to vector<64x7xi32>
    %13 = arith.cmpi eq, %11, %12 : vector<64x7xi32>
    %14 = arith.extui %13 : vector<64x7xi1> to vector<64x7xi32>
    %15 = arith.sitofp %14 : vector<64x7xi32> to vector<64x7xf32>
    %16 = arith.truncf %15 : vector<64x7xf32> to vector<64x7xbf16>
    %c0_1 = arith.constant 0 : index
    %c0_2 = arith.constant 0 : index
    %17 = vector.load %arg2[%c0_1, %c0_2] : memref<24x128xbf16, #tpu.memory_space<vmem>>, vector<24x128xbf16>
    %cst = arith.constant dense<0.000000e+00> : vector<64x128xf32>
    %18 = tpu.matmul %10, %17, %cst {dimension_numbers = #tpu.dot_dimension_numbers<[1], [0], [0], [1], [0, 0, 1, 1], [], []>} : vector<64x24xbf16>, vector<24x128xbf16>, vector<64x128xf32> -> vector<64x128xf32>
    %c0_3 = arith.constant 0 : index
    %c0_4 = arith.constant 0 : index
    %19 = vector.load %arg3[%c0_3, %c0_4] : memref<7x128xbf16, #tpu.memory_space<vmem>>, vector<7x128xbf16>
    %cst_5 = arith.constant dense<0.000000e+00> : vector<64x128xf32>
    %20 = tpu.matmul %16, %19, %cst_5 {dimension_numbers = #tpu.dot_dimension_numbers<[1], [0], [0], [1], [0, 0, 1, 1], [], []>} : vector<64x7xbf16>, vector<7x128xbf16>, vector<64x128xf32> -> vector<64x128xf32>
    %21 = arith.addf %18, %20 : vector<64x128xf32>
    %22 = vector.extract_strided_slice %0 {offsets = [0, 0], sizes = [64, 4], strides = [1, 1]} : vector<64x6xbf16> to vector<64x4xbf16>
    %c0_6 = arith.constant 0 : index
    %c0_7 = arith.constant 0 : index
    %23 = vector.load %arg4[%c0_6, %c0_7] : memref<4x128xbf16, #tpu.memory_space<vmem>>, vector<4x128xbf16>
    %cst_8 = arith.constant dense<0.000000e+00> : vector<64x128xf32>
    %24 = tpu.matmul %22, %23, %cst_8 {dimension_numbers = #tpu.dot_dimension_numbers<[1], [0], [0], [1], [0, 0, 1, 1], [], []>} : vector<64x4xbf16>, vector<4x128xbf16>, vector<64x128xf32> -> vector<64x128xf32>
    %25 = arith.addf %21, %24 : vector<64x128xf32>
    %c0_9 = arith.constant 0 : index
    %c0_10 = arith.constant 0 : index
    %26 = vector.load %arg5[%c0_9, %c0_10] : memref<1x128xf32, #tpu.memory_space<vmem>>, vector<1x128xf32>
    %27 = vector.broadcast %26 : vector<1x128xf32> to vector<64x128xf32>
    %28 = arith.addf %25, %27 : vector<64x128xf32>
    %c0_11 = arith.constant 0 : index
    %c0_12 = arith.constant 0 : index
    %29 = vector.load %arg6[%c0_11, %c0_12] : memref<32x128xbf16, #tpu.memory_space<vmem>>, vector<32x128xbf16>
    %cst_13 = arith.constant 0.000000e+00 : f32
    %30 = vector.broadcast %cst_13 : f32 to vector<8x32xf32>
    %cst_14 = arith.constant 0.000000e+00 : f32
    %31 = vector.broadcast %cst_14 : f32 to vector<8x32xf32>
    %32 = vector.extract_strided_slice %28 {offsets = [0, 0], sizes = [8, 128], strides = [1, 1]} : vector<64x128xf32> to vector<8x128xf32>
    %33 = arith.truncf %30 : vector<8x32xf32> to vector<8x32xbf16>
    %cst_15 = arith.constant dense<0.000000e+00> : vector<8x128xf32>
    %34 = tpu.matmul %33, %29, %cst_15 {dimension_numbers = #tpu.dot_dimension_numbers<[1], [0], [0], [1], [0, 0, 1, 1], [], []>} : vector<8x32xbf16>, vector<32x128xbf16>, vector<8x128xf32> -> vector<8x128xf32>
    %35 = arith.addf %32, %34 : vector<8x128xf32>
    %36 = arith.negf %35 : vector<8x128xf32>
    %37 = math.exp %36 : vector<8x128xf32>
    %cst_16 = arith.constant 1.000000e+00 : f32
    %38 = vector.broadcast %cst_16 : f32 to vector<8x128xf32>
    %39 = arith.addf %38, %37 : vector<8x128xf32>
    %40 = arith.divf %38, %39 : vector<8x128xf32>
    %41 = math.tanh %35 : vector<8x128xf32>
    %42 = vector.extract_strided_slice %40 {offsets = [0, 0], sizes = [8, 32], strides = [1, 1]} : vector<8x128xf32> to vector<8x32xf32>
    %43 = vector.extract_strided_slice %40 {offsets = [0, 32], sizes = [8, 32], strides = [1, 1]} : vector<8x128xf32> to vector<8x32xf32>
    %44 = vector.extract_strided_slice %41 {offsets = [0, 64], sizes = [8, 32], strides = [1, 1]} : vector<8x128xf32> to vector<8x32xf32>
    %45 = vector.extract_strided_slice %40 {offsets = [0, 96], sizes = [8, 32], strides = [1, 1]} : vector<8x128xf32> to vector<8x32xf32>
    %46 = arith.mulf %43, %31 : vector<8x32xf32>
    %47 = arith.mulf %42, %44 : vector<8x32xf32>
    %48 = arith.addf %46, %47 : vector<8x32xf32>
    %49 = math.tanh %48 : vector<8x32xf32>
    %50 = arith.mulf %45, %49 : vector<8x32xf32>
    %51 = vector.extract_strided_slice %28 {offsets = [8, 0], sizes = [8, 128], strides = [1, 1]} : vector<64x128xf32> to vector<8x128xf32>
    %52 = arith.truncf %50 : vector<8x32xf32> to vector<8x32xbf16>
    %cst_17 = arith.constant dense<0.000000e+00> : vector<8x128xf32>
    %53 = tpu.matmul %52, %29, %cst_17 {dimension_numbers = #tpu.dot_dimension_numbers<[1], [0], [0], [1], [0, 0, 1, 1], [], []>} : vector<8x32xbf16>, vector<32x128xbf16>, vector<8x128xf32> -> vector<8x128xf32>
    %54 = arith.addf %51, %53 : vector<8x128xf32>
    %55 = arith.negf %54 : vector<8x128xf32>
    %56 = math.exp %55 : vector<8x128xf32>
    %cst_18 = arith.constant 1.000000e+00 : f32
    %57 = vector.broadcast %cst_18 : f32 to vector<8x128xf32>
    %58 = arith.addf %57, %56 : vector<8x128xf32>
    %59 = arith.divf %57, %58 : vector<8x128xf32>
    %60 = math.tanh %54 : vector<8x128xf32>
    %61 = vector.extract_strided_slice %59 {offsets = [0, 0], sizes = [8, 32], strides = [1, 1]} : vector<8x128xf32> to vector<8x32xf32>
    %62 = vector.extract_strided_slice %59 {offsets = [0, 32], sizes = [8, 32], strides = [1, 1]} : vector<8x128xf32> to vector<8x32xf32>
    %63 = vector.extract_strided_slice %60 {offsets = [0, 64], sizes = [8, 32], strides = [1, 1]} : vector<8x128xf32> to vector<8x32xf32>
    %64 = vector.extract_strided_slice %59 {offsets = [0, 96], sizes = [8, 32], strides = [1, 1]} : vector<8x128xf32> to vector<8x32xf32>
    %65 = arith.mulf %62, %48 : vector<8x32xf32>
    %66 = arith.mulf %61, %63 : vector<8x32xf32>
    %67 = arith.addf %65, %66 : vector<8x32xf32>
    %68 = math.tanh %67 : vector<8x32xf32>
    %69 = arith.mulf %64, %68 : vector<8x32xf32>
    %70 = vector.extract_strided_slice %28 {offsets = [16, 0], sizes = [8, 128], strides = [1, 1]} : vector<64x128xf32> to vector<8x128xf32>
    %71 = arith.truncf %69 : vector<8x32xf32> to vector<8x32xbf16>
    %cst_19 = arith.constant dense<0.000000e+00> : vector<8x128xf32>
    %72 = tpu.matmul %71, %29, %cst_19 {dimension_numbers = #tpu.dot_dimension_numbers<[1], [0], [0], [1], [0, 0, 1, 1], [], []>} : vector<8x32xbf16>, vector<32x128xbf16>, vector<8x128xf32> -> vector<8x128xf32>
    %73 = arith.addf %70, %72 : vector<8x128xf32>
    %74 = arith.negf %73 : vector<8x128xf32>
    %75 = math.exp %74 : vector<8x128xf32>
    %cst_20 = arith.constant 1.000000e+00 : f32
    %76 = vector.broadcast %cst_20 : f32 to vector<8x128xf32>
    %77 = arith.addf %76, %75 : vector<8x128xf32>
    %78 = arith.divf %76, %77 : vector<8x128xf32>
    %79 = math.tanh %73 : vector<8x128xf32>
    %80 = vector.extract_strided_slice %78 {offsets = [0, 0], sizes = [8, 32], strides = [1, 1]} : vector<8x128xf32> to vector<8x32xf32>
    %81 = vector.extract_strided_slice %78 {offsets = [0, 32], sizes = [8, 32], strides = [1, 1]} : vector<8x128xf32> to vector<8x32xf32>
    %82 = vector.extract_strided_slice %79 {offsets = [0, 64], sizes = [8, 32], strides = [1, 1]} : vector<8x128xf32> to vector<8x32xf32>
    %83 = vector.extract_strided_slice %78 {offsets = [0, 96], sizes = [8, 32], strides = [1, 1]} : vector<8x128xf32> to vector<8x32xf32>
    %84 = arith.mulf %81, %67 : vector<8x32xf32>
    %85 = arith.mulf %80, %82 : vector<8x32xf32>
    %86 = arith.addf %84, %85 : vector<8x32xf32>
    %87 = math.tanh %86 : vector<8x32xf32>
    %88 = arith.mulf %83, %87 : vector<8x32xf32>
    %89 = vector.extract_strided_slice %28 {offsets = [24, 0], sizes = [8, 128], strides = [1, 1]} : vector<64x128xf32> to vector<8x128xf32>
    %90 = arith.truncf %88 : vector<8x32xf32> to vector<8x32xbf16>
    %cst_21 = arith.constant dense<0.000000e+00> : vector<8x128xf32>
    %91 = tpu.matmul %90, %29, %cst_21 {dimension_numbers = #tpu.dot_dimension_numbers<[1], [0], [0], [1], [0, 0, 1, 1], [], []>} : vector<8x32xbf16>, vector<32x128xbf16>, vector<8x128xf32> -> vector<8x128xf32>
    %92 = arith.addf %89, %91 : vector<8x128xf32>
    %93 = arith.negf %92 : vector<8x128xf32>
    %94 = math.exp %93 : vector<8x128xf32>
    %cst_22 = arith.constant 1.000000e+00 : f32
    %95 = vector.broadcast %cst_22 : f32 to vector<8x128xf32>
    %96 = arith.addf %95, %94 : vector<8x128xf32>
    %97 = arith.divf %95, %96 : vector<8x128xf32>
    %98 = math.tanh %92 : vector<8x128xf32>
    %99 = vector.extract_strided_slice %97 {offsets = [0, 0], sizes = [8, 32], strides = [1, 1]} : vector<8x128xf32> to vector<8x32xf32>
    %100 = vector.extract_strided_slice %97 {offsets = [0, 32], sizes = [8, 32], strides = [1, 1]} : vector<8x128xf32> to vector<8x32xf32>
    %101 = vector.extract_strided_slice %98 {offsets = [0, 64], sizes = [8, 32], strides = [1, 1]} : vector<8x128xf32> to vector<8x32xf32>
    %102 = vector.extract_strided_slice %97 {offsets = [0, 96], sizes = [8, 32], strides = [1, 1]} : vector<8x128xf32> to vector<8x32xf32>
    %103 = arith.mulf %100, %86 : vector<8x32xf32>
    %104 = arith.mulf %99, %101 : vector<8x32xf32>
    %105 = arith.addf %103, %104 : vector<8x32xf32>
    %106 = math.tanh %105 : vector<8x32xf32>
    %107 = arith.mulf %102, %106 : vector<8x32xf32>
    %108 = vector.extract_strided_slice %28 {offsets = [32, 0], sizes = [8, 128], strides = [1, 1]} : vector<64x128xf32> to vector<8x128xf32>
    %109 = arith.truncf %107 : vector<8x32xf32> to vector<8x32xbf16>
    %cst_23 = arith.constant dense<0.000000e+00> : vector<8x128xf32>
    %110 = tpu.matmul %109, %29, %cst_23 {dimension_numbers = #tpu.dot_dimension_numbers<[1], [0], [0], [1], [0, 0, 1, 1], [], []>} : vector<8x32xbf16>, vector<32x128xbf16>, vector<8x128xf32> -> vector<8x128xf32>
    %111 = arith.addf %108, %110 : vector<8x128xf32>
    %112 = arith.negf %111 : vector<8x128xf32>
    %113 = math.exp %112 : vector<8x128xf32>
    %cst_24 = arith.constant 1.000000e+00 : f32
    %114 = vector.broadcast %cst_24 : f32 to vector<8x128xf32>
    %115 = arith.addf %114, %113 : vector<8x128xf32>
    %116 = arith.divf %114, %115 : vector<8x128xf32>
    %117 = math.tanh %111 : vector<8x128xf32>
    %118 = vector.extract_strided_slice %116 {offsets = [0, 0], sizes = [8, 32], strides = [1, 1]} : vector<8x128xf32> to vector<8x32xf32>
    %119 = vector.extract_strided_slice %116 {offsets = [0, 32], sizes = [8, 32], strides = [1, 1]} : vector<8x128xf32> to vector<8x32xf32>
    %120 = vector.extract_strided_slice %117 {offsets = [0, 64], sizes = [8, 32], strides = [1, 1]} : vector<8x128xf32> to vector<8x32xf32>
    %121 = vector.extract_strided_slice %116 {offsets = [0, 96], sizes = [8, 32], strides = [1, 1]} : vector<8x128xf32> to vector<8x32xf32>
    %122 = arith.mulf %119, %105 : vector<8x32xf32>
    %123 = arith.mulf %118, %120 : vector<8x32xf32>
    %124 = arith.addf %122, %123 : vector<8x32xf32>
    %125 = math.tanh %124 : vector<8x32xf32>
    %126 = arith.mulf %121, %125 : vector<8x32xf32>
    %127 = vector.extract_strided_slice %28 {offsets = [40, 0], sizes = [8, 128], strides = [1, 1]} : vector<64x128xf32> to vector<8x128xf32>
    %128 = arith.truncf %126 : vector<8x32xf32> to vector<8x32xbf16>
    %cst_25 = arith.constant dense<0.000000e+00> : vector<8x128xf32>
    %129 = tpu.matmul %128, %29, %cst_25 {dimension_numbers = #tpu.dot_dimension_numbers<[1], [0], [0], [1], [0, 0, 1, 1], [], []>} : vector<8x32xbf16>, vector<32x128xbf16>, vector<8x128xf32> -> vector<8x128xf32>
    %130 = arith.addf %127, %129 : vector<8x128xf32>
    %131 = arith.negf %130 : vector<8x128xf32>
    %132 = math.exp %131 : vector<8x128xf32>
    %cst_26 = arith.constant 1.000000e+00 : f32
    %133 = vector.broadcast %cst_26 : f32 to vector<8x128xf32>
    %134 = arith.addf %133, %132 : vector<8x128xf32>
    %135 = arith.divf %133, %134 : vector<8x128xf32>
    %136 = math.tanh %130 : vector<8x128xf32>
    %137 = vector.extract_strided_slice %135 {offsets = [0, 0], sizes = [8, 32], strides = [1, 1]} : vector<8x128xf32> to vector<8x32xf32>
    %138 = vector.extract_strided_slice %135 {offsets = [0, 32], sizes = [8, 32], strides = [1, 1]} : vector<8x128xf32> to vector<8x32xf32>
    %139 = vector.extract_strided_slice %136 {offsets = [0, 64], sizes = [8, 32], strides = [1, 1]} : vector<8x128xf32> to vector<8x32xf32>
    %140 = vector.extract_strided_slice %135 {offsets = [0, 96], sizes = [8, 32], strides = [1, 1]} : vector<8x128xf32> to vector<8x32xf32>
    %141 = arith.mulf %138, %124 : vector<8x32xf32>
    %142 = arith.mulf %137, %139 : vector<8x32xf32>
    %143 = arith.addf %141, %142 : vector<8x32xf32>
    %144 = math.tanh %143 : vector<8x32xf32>
    %145 = arith.mulf %140, %144 : vector<8x32xf32>
    %146 = vector.extract_strided_slice %28 {offsets = [48, 0], sizes = [8, 128], strides = [1, 1]} : vector<64x128xf32> to vector<8x128xf32>
    %147 = arith.truncf %145 : vector<8x32xf32> to vector<8x32xbf16>
    %cst_27 = arith.constant dense<0.000000e+00> : vector<8x128xf32>
    %148 = tpu.matmul %147, %29, %cst_27 {dimension_numbers = #tpu.dot_dimension_numbers<[1], [0], [0], [1], [0, 0, 1, 1], [], []>} : vector<8x32xbf16>, vector<32x128xbf16>, vector<8x128xf32> -> vector<8x128xf32>
    %149 = arith.addf %146, %148 : vector<8x128xf32>
    %150 = arith.negf %149 : vector<8x128xf32>
    %151 = math.exp %150 : vector<8x128xf32>
    %cst_28 = arith.constant 1.000000e+00 : f32
    %152 = vector.broadcast %cst_28 : f32 to vector<8x128xf32>
    %153 = arith.addf %152, %151 : vector<8x128xf32>
    %154 = arith.divf %152, %153 : vector<8x128xf32>
    %155 = math.tanh %149 : vector<8x128xf32>
    %156 = vector.extract_strided_slice %154 {offsets = [0, 0], sizes = [8, 32], strides = [1, 1]} : vector<8x128xf32> to vector<8x32xf32>
    %157 = vector.extract_strided_slice %154 {offsets = [0, 32], sizes = [8, 32], strides = [1, 1]} : vector<8x128xf32> to vector<8x32xf32>
    %158 = vector.extract_strided_slice %155 {offsets = [0, 64], sizes = [8, 32], strides = [1, 1]} : vector<8x128xf32> to vector<8x32xf32>
    %159 = vector.extract_strided_slice %154 {offsets = [0, 96], sizes = [8, 32], strides = [1, 1]} : vector<8x128xf32> to vector<8x32xf32>
    %160 = arith.mulf %157, %143 : vector<8x32xf32>
    %161 = arith.mulf %156, %158 : vector<8x32xf32>
    %162 = arith.addf %160, %161 : vector<8x32xf32>
    %163 = math.tanh %162 : vector<8x32xf32>
    %164 = arith.mulf %159, %163 : vector<8x32xf32>
    %165 = vector.extract_strided_slice %28 {offsets = [56, 0], sizes = [8, 128], strides = [1, 1]} : vector<64x128xf32> to vector<8x128xf32>
    %166 = arith.truncf %164 : vector<8x32xf32> to vector<8x32xbf16>
    %cst_29 = arith.constant dense<0.000000e+00> : vector<8x128xf32>
    %167 = tpu.matmul %166, %29, %cst_29 {dimension_numbers = #tpu.dot_dimension_numbers<[1], [0], [0], [1], [0, 0, 1, 1], [], []>} : vector<8x32xbf16>, vector<32x128xbf16>, vector<8x128xf32> -> vector<8x128xf32>
    %168 = arith.addf %165, %167 : vector<8x128xf32>
    %169 = arith.negf %168 : vector<8x128xf32>
    %170 = math.exp %169 : vector<8x128xf32>
    %cst_30 = arith.constant 1.000000e+00 : f32
    %171 = vector.broadcast %cst_30 : f32 to vector<8x128xf32>
    %172 = arith.addf %171, %170 : vector<8x128xf32>
    %173 = arith.divf %171, %172 : vector<8x128xf32>
    %174 = math.tanh %168 : vector<8x128xf32>
    %175 = vector.extract_strided_slice %173 {offsets = [0, 0], sizes = [8, 32], strides = [1, 1]} : vector<8x128xf32> to vector<8x32xf32>
    %176 = vector.extract_strided_slice %173 {offsets = [0, 32], sizes = [8, 32], strides = [1, 1]} : vector<8x128xf32> to vector<8x32xf32>
    %177 = vector.extract_strided_slice %174 {offsets = [0, 64], sizes = [8, 32], strides = [1, 1]} : vector<8x128xf32> to vector<8x32xf32>
    %178 = vector.extract_strided_slice %173 {offsets = [0, 96], sizes = [8, 32], strides = [1, 1]} : vector<8x128xf32> to vector<8x32xf32>
    %179 = arith.mulf %176, %162 : vector<8x32xf32>
    %180 = arith.mulf %175, %177 : vector<8x32xf32>
    %181 = arith.addf %179, %180 : vector<8x32xf32>
    %182 = math.tanh %181 : vector<8x32xf32>
    %183 = arith.mulf %178, %182 : vector<8x32xf32>
    %c0_31 = arith.constant 0 : index
    %c0_32 = arith.constant 0 : index
    %184 = vector.load %arg8[%c0_31, %c0_32] : memref<32x128xbf16, #tpu.memory_space<vmem>>, vector<32x128xbf16>
    %c0_33 = arith.constant 0 : index
    %c0_34 = arith.constant 0 : index
    %185 = vector.load %arg10[%c0_33, %c0_34] : memref<1x128xf32, #tpu.memory_space<vmem>>, vector<1x128xf32>
    %186 = vector.shape_cast %185 : vector<1x128xf32> to vector<1x128xf32>
    %187 = vector.broadcast %186 : vector<1x128xf32> to vector<8x128xf32>
    %c0_35 = arith.constant 0 : index
    %c0_36 = arith.constant 0 : index
    %188 = vector.load %arg1[%c0_35, %c0_36] : memref<48x2xbf16, #tpu.memory_space<vmem>>, vector<48x2xbf16>
    %c0_37 = arith.constant 0 : index
    %c0_38 = arith.constant 0 : index
    %189 = vector.load %arg7[%c0_37, %c0_38] : memref<2x128xbf16, #tpu.memory_space<vmem>>, vector<2x128xbf16>
    %cst_39 = arith.constant dense<0.000000e+00> : vector<48x128xf32>
    %190 = tpu.matmul %188, %189, %cst_39 {dimension_numbers = #tpu.dot_dimension_numbers<[1], [0], [0], [1], [0, 0, 1, 1], [], []>} : vector<48x2xbf16>, vector<2x128xbf16>, vector<48x128xf32> -> vector<48x128xf32>
    %c0_40 = arith.constant 0 : index
    %c0_41 = arith.constant 0 : index
    %191 = vector.load %arg10[%c0_40, %c0_41] : memref<1x128xf32, #tpu.memory_space<vmem>>, vector<1x128xf32>
    %192 = vector.broadcast %191 : vector<1x128xf32> to vector<48x128xf32>
    %193 = arith.addf %190, %192 : vector<48x128xf32>
    %194 = arith.truncf %183 : vector<8x32xf32> to vector<8x32xbf16>
    %cst_42 = arith.constant dense<0.000000e+00> : vector<8x128xf32>
    %195 = tpu.matmul %194, %184, %cst_42 {dimension_numbers = #tpu.dot_dimension_numbers<[1], [0], [0], [1], [0, 0, 1, 1], [], []>} : vector<8x32xbf16>, vector<32x128xbf16>, vector<8x128xf32> -> vector<8x128xf32>
    %196 = arith.addf %187, %195 : vector<8x128xf32>
    %197 = arith.negf %196 : vector<8x128xf32>
    %198 = math.exp %197 : vector<8x128xf32>
    %cst_43 = arith.constant 1.000000e+00 : f32
    %199 = vector.broadcast %cst_43 : f32 to vector<8x128xf32>
    %200 = arith.addf %199, %198 : vector<8x128xf32>
    %201 = arith.divf %199, %200 : vector<8x128xf32>
    %202 = math.tanh %196 : vector<8x128xf32>
    %203 = vector.extract_strided_slice %201 {offsets = [0, 0], sizes = [8, 32], strides = [1, 1]} : vector<8x128xf32> to vector<8x32xf32>
    %204 = vector.extract_strided_slice %201 {offsets = [0, 32], sizes = [8, 32], strides = [1, 1]} : vector<8x128xf32> to vector<8x32xf32>
    %205 = vector.extract_strided_slice %202 {offsets = [0, 64], sizes = [8, 32], strides = [1, 1]} : vector<8x128xf32> to vector<8x32xf32>
    %206 = vector.extract_strided_slice %201 {offsets = [0, 96], sizes = [8, 32], strides = [1, 1]} : vector<8x128xf32> to vector<8x32xf32>
    %207 = arith.mulf %204, %181 : vector<8x32xf32>
    %208 = arith.mulf %203, %205 : vector<8x32xf32>
    %209 = arith.addf %207, %208 : vector<8x32xf32>
    %210 = math.tanh %209 : vector<8x32xf32>
    %211 = arith.mulf %206, %210 : vector<8x32xf32>
    %212 = vector.extract_strided_slice %193 {offsets = [8, 0], sizes = [8, 128], strides = [1, 1]} : vector<48x128xf32> to vector<8x128xf32>
    %213 = arith.truncf %211 : vector<8x32xf32> to vector<8x32xbf16>
    %cst_44 = arith.constant dense<0.000000e+00> : vector<8x128xf32>
    %214 = tpu.matmul %213, %184, %cst_44 {dimension_numbers = #tpu.dot_dimension_numbers<[1], [0], [0], [1], [0, 0, 1, 1], [], []>} : vector<8x32xbf16>, vector<32x128xbf16>, vector<8x128xf32> -> vector<8x128xf32>
    %215 = arith.addf %212, %214 : vector<8x128xf32>
    %216 = arith.negf %215 : vector<8x128xf32>
    %217 = math.exp %216 : vector<8x128xf32>
    %cst_45 = arith.constant 1.000000e+00 : f32
    %218 = vector.broadcast %cst_45 : f32 to vector<8x128xf32>
    %219 = arith.addf %218, %217 : vector<8x128xf32>
    %220 = arith.divf %218, %219 : vector<8x128xf32>
    %221 = math.tanh %215 : vector<8x128xf32>
    %222 = vector.extract_strided_slice %220 {offsets = [0, 0], sizes = [8, 32], strides = [1, 1]} : vector<8x128xf32> to vector<8x32xf32>
    %223 = vector.extract_strided_slice %220 {offsets = [0, 32], sizes = [8, 32], strides = [1, 1]} : vector<8x128xf32> to vector<8x32xf32>
    %224 = vector.extract_strided_slice %221 {offsets = [0, 64], sizes = [8, 32], strides = [1, 1]} : vector<8x128xf32> to vector<8x32xf32>
    %225 = vector.extract_strided_slice %220 {offsets = [0, 96], sizes = [8, 32], strides = [1, 1]} : vector<8x128xf32> to vector<8x32xf32>
    %226 = arith.mulf %223, %209 : vector<8x32xf32>
    %227 = arith.mulf %222, %224 : vector<8x32xf32>
    %228 = arith.addf %226, %227 : vector<8x32xf32>
    %229 = math.tanh %228 : vector<8x32xf32>
    %230 = arith.mulf %225, %229 : vector<8x32xf32>
    %231 = vector.extract_strided_slice %193 {offsets = [16, 0], sizes = [8, 128], strides = [1, 1]} : vector<48x128xf32> to vector<8x128xf32>
    %232 = arith.truncf %230 : vector<8x32xf32> to vector<8x32xbf16>
    %cst_46 = arith.constant dense<0.000000e+00> : vector<8x128xf32>
    %233 = tpu.matmul %232, %184, %cst_46 {dimension_numbers = #tpu.dot_dimension_numbers<[1], [0], [0], [1], [0, 0, 1, 1], [], []>} : vector<8x32xbf16>, vector<32x128xbf16>, vector<8x128xf32> -> vector<8x128xf32>
    %234 = arith.addf %231, %233 : vector<8x128xf32>
    %235 = arith.negf %234 : vector<8x128xf32>
    %236 = math.exp %235 : vector<8x128xf32>
    %cst_47 = arith.constant 1.000000e+00 : f32
    %237 = vector.broadcast %cst_47 : f32 to vector<8x128xf32>
    %238 = arith.addf %237, %236 : vector<8x128xf32>
    %239 = arith.divf %237, %238 : vector<8x128xf32>
    %240 = math.tanh %234 : vector<8x128xf32>
    %241 = vector.extract_strided_slice %239 {offsets = [0, 0], sizes = [8, 32], strides = [1, 1]} : vector<8x128xf32> to vector<8x32xf32>
    %242 = vector.extract_strided_slice %239 {offsets = [0, 32], sizes = [8, 32], strides = [1, 1]} : vector<8x128xf32> to vector<8x32xf32>
    %243 = vector.extract_strided_slice %240 {offsets = [0, 64], sizes = [8, 32], strides = [1, 1]} : vector<8x128xf32> to vector<8x32xf32>
    %244 = vector.extract_strided_slice %239 {offsets = [0, 96], sizes = [8, 32], strides = [1, 1]} : vector<8x128xf32> to vector<8x32xf32>
    %245 = arith.mulf %242, %228 : vector<8x32xf32>
    %246 = arith.mulf %241, %243 : vector<8x32xf32>
    %247 = arith.addf %245, %246 : vector<8x32xf32>
    %248 = math.tanh %247 : vector<8x32xf32>
    %249 = arith.mulf %244, %248 : vector<8x32xf32>
    %250 = vector.extract_strided_slice %193 {offsets = [24, 0], sizes = [8, 128], strides = [1, 1]} : vector<48x128xf32> to vector<8x128xf32>
    %251 = arith.truncf %249 : vector<8x32xf32> to vector<8x32xbf16>
    %cst_48 = arith.constant dense<0.000000e+00> : vector<8x128xf32>
    %252 = tpu.matmul %251, %184, %cst_48 {dimension_numbers = #tpu.dot_dimension_numbers<[1], [0], [0], [1], [0, 0, 1, 1], [], []>} : vector<8x32xbf16>, vector<32x128xbf16>, vector<8x128xf32> -> vector<8x128xf32>
    %253 = arith.addf %250, %252 : vector<8x128xf32>
    %254 = arith.negf %253 : vector<8x128xf32>
    %255 = math.exp %254 : vector<8x128xf32>
    %cst_49 = arith.constant 1.000000e+00 : f32
    %256 = vector.broadcast %cst_49 : f32 to vector<8x128xf32>
    %257 = arith.addf %256, %255 : vector<8x128xf32>
    %258 = arith.divf %256, %257 : vector<8x128xf32>
    %259 = math.tanh %253 : vector<8x128xf32>
    %260 = vector.extract_strided_slice %258 {offsets = [0, 0], sizes = [8, 32], strides = [1, 1]} : vector<8x128xf32> to vector<8x32xf32>
    %261 = vector.extract_strided_slice %258 {offsets = [0, 32], sizes = [8, 32], strides = [1, 1]} : vector<8x128xf32> to vector<8x32xf32>
    %262 = vector.extract_strided_slice %259 {offsets = [0, 64], sizes = [8, 32], strides = [1, 1]} : vector<8x128xf32> to vector<8x32xf32>
    %263 = vector.extract_strided_slice %258 {offsets = [0, 96], sizes = [8, 32], strides = [1, 1]} : vector<8x128xf32> to vector<8x32xf32>
    %264 = arith.mulf %261, %247 : vector<8x32xf32>
    %265 = arith.mulf %260, %262 : vector<8x32xf32>
    %266 = arith.addf %264, %265 : vector<8x32xf32>
    %267 = math.tanh %266 : vector<8x32xf32>
    %268 = arith.mulf %263, %267 : vector<8x32xf32>
    %269 = vector.extract_strided_slice %193 {offsets = [32, 0], sizes = [8, 128], strides = [1, 1]} : vector<48x128xf32> to vector<8x128xf32>
    %270 = arith.truncf %268 : vector<8x32xf32> to vector<8x32xbf16>
    %cst_50 = arith.constant dense<0.000000e+00> : vector<8x128xf32>
    %271 = tpu.matmul %270, %184, %cst_50 {dimension_numbers = #tpu.dot_dimension_numbers<[1], [0], [0], [1], [0, 0, 1, 1], [], []>} : vector<8x32xbf16>, vector<32x128xbf16>, vector<8x128xf32> -> vector<8x128xf32>
    %272 = arith.addf %269, %271 : vector<8x128xf32>
    %273 = arith.negf %272 : vector<8x128xf32>
    %274 = math.exp %273 : vector<8x128xf32>
    %cst_51 = arith.constant 1.000000e+00 : f32
    %275 = vector.broadcast %cst_51 : f32 to vector<8x128xf32>
    %276 = arith.addf %275, %274 : vector<8x128xf32>
    %277 = arith.divf %275, %276 : vector<8x128xf32>
    %278 = math.tanh %272 : vector<8x128xf32>
    %279 = vector.extract_strided_slice %277 {offsets = [0, 0], sizes = [8, 32], strides = [1, 1]} : vector<8x128xf32> to vector<8x32xf32>
    %280 = vector.extract_strided_slice %277 {offsets = [0, 32], sizes = [8, 32], strides = [1, 1]} : vector<8x128xf32> to vector<8x32xf32>
    %281 = vector.extract_strided_slice %278 {offsets = [0, 64], sizes = [8, 32], strides = [1, 1]} : vector<8x128xf32> to vector<8x32xf32>
    %282 = vector.extract_strided_slice %277 {offsets = [0, 96], sizes = [8, 32], strides = [1, 1]} : vector<8x128xf32> to vector<8x32xf32>
    %283 = arith.mulf %280, %266 : vector<8x32xf32>
    %284 = arith.mulf %279, %281 : vector<8x32xf32>
    %285 = arith.addf %283, %284 : vector<8x32xf32>
    %286 = math.tanh %285 : vector<8x32xf32>
    %287 = arith.mulf %282, %286 : vector<8x32xf32>
    %288 = vector.extract_strided_slice %193 {offsets = [40, 0], sizes = [8, 128], strides = [1, 1]} : vector<48x128xf32> to vector<8x128xf32>
    %289 = arith.truncf %287 : vector<8x32xf32> to vector<8x32xbf16>
    %cst_52 = arith.constant dense<0.000000e+00> : vector<8x128xf32>
    %290 = tpu.matmul %289, %184, %cst_52 {dimension_numbers = #tpu.dot_dimension_numbers<[1], [0], [0], [1], [0, 0, 1, 1], [], []>} : vector<8x32xbf16>, vector<32x128xbf16>, vector<8x128xf32> -> vector<8x128xf32>
    %291 = arith.addf %288, %290 : vector<8x128xf32>
    %292 = arith.negf %291 : vector<8x128xf32>
    %293 = math.exp %292 : vector<8x128xf32>
    %cst_53 = arith.constant 1.000000e+00 : f32
    %294 = vector.broadcast %cst_53 : f32 to vector<8x128xf32>
    %295 = arith.addf %294, %293 : vector<8x128xf32>
    %296 = arith.divf %294, %295 : vector<8x128xf32>
    %297 = math.tanh %291 : vector<8x128xf32>
    %298 = vector.extract_strided_slice %296 {offsets = [0, 0], sizes = [8, 32], strides = [1, 1]} : vector<8x128xf32> to vector<8x32xf32>
    %299 = vector.extract_strided_slice %296 {offsets = [0, 32], sizes = [8, 32], strides = [1, 1]} : vector<8x128xf32> to vector<8x32xf32>
    %300 = vector.extract_strided_slice %297 {offsets = [0, 64], sizes = [8, 32], strides = [1, 1]} : vector<8x128xf32> to vector<8x32xf32>
    %301 = vector.extract_strided_slice %296 {offsets = [0, 96], sizes = [8, 32], strides = [1, 1]} : vector<8x128xf32> to vector<8x32xf32>
    %302 = arith.mulf %299, %285 : vector<8x32xf32>
    %303 = arith.mulf %298, %300 : vector<8x32xf32>
    %304 = arith.addf %302, %303 : vector<8x32xf32>
    %305 = math.tanh %304 : vector<8x32xf32>
    %306 = arith.mulf %301, %305 : vector<8x32xf32>
    %307 = tpu.concatenate %211, %230, %249, %268, %287, %306 in 0 : vector<8x32xf32>, vector<8x32xf32>, vector<8x32xf32>, vector<8x32xf32>, vector<8x32xf32>, vector<8x32xf32> -> vector<48x32xf32>
    %308 = arith.truncf %307 : vector<48x32xf32> to vector<48x32xbf16>
    %c0_54 = arith.constant 0 : index
    %c0_55 = arith.constant 0 : index
    %309 = vector.load %arg12[%c0_54, %c0_55] : memref<32x2xbf16, #tpu.memory_space<vmem>>, vector<32x2xbf16>
    %cst_56 = arith.constant dense<0.000000e+00> : vector<48x2xf32>
    %310 = tpu.matmul %308, %309, %cst_56 {dimension_numbers = #tpu.dot_dimension_numbers<[1], [0], [0], [1], [0, 0, 1, 1], [], []>} : vector<48x32xbf16>, vector<32x2xbf16>, vector<48x2xf32> -> vector<48x2xf32>
    %c0_57 = arith.constant 0 : index
    %c0_58 = arith.constant 0 : index
    %311 = vector.load %arg13[%c0_57, %c0_58] : memref<1x2xf32, #tpu.memory_space<vmem>>, vector<1x2xf32>
    %312 = vector.broadcast %311 : vector<1x2xf32> to vector<48x2xf32>
    %313 = arith.addf %310, %312 : vector<48x2xf32>
    %c0_59 = arith.constant 0 : index
    %c0_60 = arith.constant 0 : index
    %314 = vector.load %arg14[%c0_59, %c0_60] : memref<48x2xf32, #tpu.memory_space<vmem>>, vector<48x2xf32>
    tpu.vector_store %arg14[%c0_59, %c0_60], %313 {strides = array<i32>} : memref<48x2xf32, #tpu.memory_space<vmem>>, vector<48x2xf32>,
    return
  }
}

</mosaic_0001>

<bundles_post_ra>
// kernel: seq2seq_forward.1
= control target key start
LH: loop header
LB: loop body
LE: loop exit
PB: predicated region body
PF: predicated region fallthrough
CT: control target
= control target key end

     0   :  { %v2217_v0 = vmov 4   ;;  %vm195_vm0 = vcmask 1042432   ;;  %vm196_vm1 = vcmask 1043456   ;;  %v2218_v24 = vmov 65535   ;;  %s2224_s26 = smov 32   ;;  %s2695_s0 = inlined_call_operand.vmem [shape: bf16[64,6], index: 0, kind: input, shape index: {}]   ;;  %s2696_s9 = inlined_call_operand.vmem [shape: bf16[32,128], index: 9, kind: input, shape index: {}]   ;;  %s2697_s11 = inlined_call_operand.vmem [shape: f32[1,128], index: 11, kind: input, shape index: {}]   ;;  %s2698_s3 = inlined_call_operand.vmem [shape: bf16[7,128], index: 3, kind: input, shape index: {}]   ;;  %s2699_s2 = inlined_call_operand.vmem [shape: bf16[24,128], index: 2, kind: input, shape index: {}]   ;;  %s2700_s6 = inlined_call_operand.vmem [shape: bf16[32,128], index: 6, kind: input, shape index: {}]   ;;  %s2701_s4 = inlined_call_operand.vmem [shape: bf16[4,128], index: 4, kind: input, shape index: {}]   ;;  %s2702_s5 = inlined_call_operand.vmem [shape: f32[1,128], index: 5, kind: input, shape index: {}]   ;;  %s2703_s8 = inlined_call_operand.vmem [shape: bf16[32,128], index: 8, kind: input, shape index: {}]   ;;  %s2704_s10 = inlined_call_operand.vmem [shape: f32[1,128], index: 10, kind: input, shape index: {}]   ;;  %s2705_s7 = inlined_call_operand.vmem [shape: bf16[2,128], index: 7, kind: input, shape index: {}]   ;;  %s2706_s1 = inlined_call_operand.vmem [shape: bf16[48,2], index: 1, kind: input, shape index: {}]   ;;  %s2707_s12 = inlined_call_operand.vmem [shape: bf16[32,2], index: 12, kind: input, shape index: {}]   ;;  %s2708_s13 = inlined_call_operand.vmem [shape: f32[1,2], index: 13, kind: input, shape index: {}]   ;;  %s2709_s14 = inlined_call_operand.vmem [shape: f32[48,2], index: 14, kind: output, shape index: {}]  }
   0x1   :  { %2082 = vset.pattern.permute.xlu1 %v2217_v0  ;;  %2081 = vset.pattern.permute.xlu0 %v2217_v0  ;;  %v2305_v1 = vld [vmem:[%s2695_s0 + $0x8] sm:$0xff]   ;;  %v2310_v2 = vld [vmem:[%s2695_s0] sm:$0xff]   ;;  %v2315_v3 = vld [vmem:[%s2695_s0 + $0x10] sm:$0xff]   ;;  %v197_v25 = vsel %vm195_vm0, 4294967295, %v2218_v24  ;;  %v2219_v36 = vmov 5   ;;  %v2220_v38 = vmov 0.0   ;;  %v72_v39 = vlaneseq }
   0x2   :  { %v58_v4 = vunpack.c.l.bf16 %v2305_v1  ;;  %v56_v5 = vunpack.c.l.bf16 %v2310_v2  ;;  %v59_v6 = vunpack.c.h.bf16 %v2305_v1  ;;  %v57_v7 = vunpack.c.h.bf16 %v2310_v2  ;;  %v2326_v12 = vld [vmem:[%s2695_s0 + $0x18] sm:$0xff]   ;;  %v181_v23 = vld [vmem:[%s2698_s3] sm:$0xf]  ;;  %v2090_v32 = vld [vmem:[%s2699_s2 + $0x8] ss:$0 sps:$4 sm:$0xff]  }
   0x3   :  { %v61_v8 = vunpack.c.h.bf16 %v2315_v3  ;;  %v60_v11 = vunpack.c.l.bf16 %v2315_v3  ;;  %v63_v18 = vunpack.c.h.bf16 %v2326_v12  ;;  %v62_v22 = vunpack.c.l.bf16 %v2326_v12  ;;  %2055 = vmatprep.subr.msk.bf16.mxu1 %vm196_vm1, %v2090_v32  ;;  %v2091_v37 = vld [vmem:[%s2699_s2] sm:$0xff]  }
   0x4   :  { %v2061_v9 = vtrunc.f32 %v58_v4  ;;  %v2057_v10 = vtrunc.f32 %v56_v5  ;;  %v2063_v13 = vtrunc.f32 %v59_v6  ;;  %v2059_v14 = vtrunc.f32 %v57_v7  ;;  %v357_v58 = vld [vmem:[%s2701_s4] sm:$0x3] }
   0x5   :  { %v2067_v17 = vtrunc.f32 %v61_v8  ;;  %v2065_v21 = vtrunc.f32 %v60_v11  ;;  %v2071_v26 = vtrunc.f32 %v63_v18  ;;  %v198_v27 = vsel %vm196_vm1, %v197_v25, 0 }
   0x6   :  { %v2062_v15 = vcvt.f32.s32 %v2061_v9  ;;  %v2058_v16 = vcvt.f32.s32 %v2057_v10  ;;  %v2064_v19 = vcvt.f32.s32 %v2063_v13  ;;  %v2060_v20 = vcvt.f32.s32 %v2059_v14 }
   0x7   :  { %v2068_v28 = vcvt.f32.s32 %v2067_v17  ;;  %v2066_v29 = vcvt.f32.s32 %v2065_v21  ;;  %v2069_v30 = vtrunc.f32 %v62_v22  ;;  %v200_v31 = vand.u32 %v198_v27, %v181_v23  ;;  %v2397_v22 = vld [vmem:[%s2700_s6 + $0x8] sm:$0xff]   ;;  %v2406_v23 = vld [vmem:[%s2700_s6] sm:$0xff]  }
   0x8   :  { %133 = vperm.xlu1 %2082, %v2062_v15   ;;  %127 = vperm.xlu0 %2081, %v2058_v16   ;;  %v2072_v33 = vcvt.f32.s32 %v2071_v26  ;;  %v290_v35 = vsel %vm196_vm1, %v2090_v32, 0  ;;  %v2345_v40 = vand.u32 127, %v72_v39  ;;  %vm182_vm6 = vcmask 56320  }
   0x9   :  { %1876 = vmatprep.subr.bf16.mxu0 %v200_v31  ;;  %v2070_v34 = vcvt.f32.s32 %v2069_v30  ;;  %2052 = vmatpush3.bf16.msra.mxu1 %v290_v35  ;;  %vm391_vm11 = vcmask 1041408   ;;  %vm276_vm14 = vcmask 195584  }
   0xa   :  { %1877 = vmatpush3.bf16.msra.mxu0 %v200_v31  ;;  %2051 = vmatprep.subr.bf16.mxu1 %v2091_v37  ;;  %v393_v11 = vsel %vm391_vm11, %v357_v58, 0 }
   0xb   :  { %2054 = vmatprep.subr.msk.bf16.mxu0 %vm196_vm1, %v2090_v32  ;;  %vm378_vm1 = vcmask 31744  }
   0xc   :  { %136 = vperm.xlu1 %2082, %v2064_v19   ;;  %130 = vperm.xlu0 %2081, %v2060_v20  }
   0xd   :  { %2053 = vmatpush3.bf16.msra.mxu1 %v2091_v37 }
   0xe   :  { %1908 = vmatprep.subr.bf16.mxu1 %v2220_v38 }
  0x10   :  { %142 = vperm.xlu1 %2082, %v2068_v28   ;;  %139 = vperm.xlu0 %2081, %v2066_v29  }
  0x14   :  { %148 = vperm.xlu1 %2082, %v2072_v33   ;;  %145 = vperm.xlu0 %2081, %v2070_v34  }
  0x18   :  { %2084 = vset.pattern.permute.xlu1 %v2219_v36  ;;  %2083 = vset.pattern.permute.xlu0 %v2219_v36 }
  0x19   :  { %78 = vperm.xlu1 %2084, %v2060_v20   ;;  %75 = vperm.xlu0 %2083, %v2058_v16  }
  0x1d   :  { %81 = vperm.xlu1 %2084, %v2062_v15   ;;  %84 = vperm.xlu0 %2083, %v2064_v19  }
  0x21   :  { %87 = vperm.xlu1 %2084, %v2066_v29   ;;  %90 = vperm.xlu0 %2083, %v2068_v28  }
  0x25   :  { %93 = vperm.xlu1 %2084, %v2070_v34   ;;  %96 = vperm.xlu0 %2083, %v2072_v33  }
  0x29   :  { %2085 = vset.pattern.permute.xlu0 %v2217_v0 }
  0x83   :  { %v134_v41 = vpop.permute.xlu1 %133  ;;  %v128_v42 = vpop.permute.xlu0 %127 }
  0x84   :  { %vm152_vm2 = vcmp.eq.s32.totalorder %v2345_v40, %v134_v41  ;;  %vm150_vm3 = vcmp.eq.s32.totalorder %v2345_v40, %v128_v42 }
  0x85   :  { %v1740_v45 = vsel %vm152_vm2, 1.0, %v2220_v38  ;;  %v1738_v46 = vsel %vm150_vm3, 1.0, %v2220_v38 }
  0x87   :  { %v137_v43 = vpop.permute.xlu1 %136  ;;  %v131_v44 = vpop.permute.xlu0 %130 }
  0x88   :  { %vm153_vm4 = vcmp.eq.s32.totalorder %v2345_v40, %v137_v43  ;;  %vm151_vm5 = vcmp.eq.s32.totalorder %v2345_v40, %v131_v44 }
  0x89   :  { %v1741_v47 = vsel %vm153_vm4, 1.0, %v2220_v38  ;;  %v1739_v48 = vsel %vm151_vm5, 1.0, %v2220_v38 }
  0x8a   :  { %v175_v49 = vpack.c.bf16 %v1741_v47, %v1740_v45  ;;  %v174_v50 = vpack.c.bf16 %v1739_v48, %v1738_v46 }
  0x8b   :  { %v143_v51 = vpop.permute.xlu1 %142  ;;  %v140_v52 = vpop.permute.xlu0 %139 }
  0x8c   :  { %vm155_vm7 = vcmp.eq.s32.totalorder %v2345_v40, %v143_v51  ;;  %vm154_vm8 = vcmp.eq.s32.totalorder %v2345_v40, %v140_v52  ;;  %1878 = vmatprep.mubr.msk.bf16.mxu0 %vm182_vm6, %v174_v50 }
  0x8d   :  { %v1743_v53 = vsel %vm155_vm7, 1.0, %v2220_v38  ;;  %v1742_v54 = vsel %vm154_vm8, 1.0, %v2220_v38  ;;  %1879 = vmatmul.mubr.msk.bf16.vlgmr.msra.gmra.mxu0 %vm182_vm6, %v175_v49  ;;  %vm499_vm7 = vcmask 261120   ;;  %vm1115_vm8 = vcmask 1040384  }
  0x8e   :  { %v176_v55 = vpack.c.bf16 %v1743_v53, %v1742_v54  ;;  %1887 = vmatpush3.bf16.msra.mxu0 %v290_v35 }
  0x8f   :  { %v149_v56 = vpop.permute.xlu1 %148  ;;  %v146_v57 = vpop.permute.xlu0 %145  ;;  %1888 = vmatprep.subr.bf16.mxu0 %v2091_v37 }
  0x90   :  { %vm157_vm9 = vcmp.eq.s32.totalorder %v2345_v40, %v149_v56  ;;  %vm156_vm10 = vcmp.eq.s32.totalorder %v2345_v40, %v146_v57  ;;  %1882 = vmatprep.mubr.msk.bf16.mxu0 %vm182_vm6, %v176_v55 }
  0x91   :  { %v1745_v59 = vsel %vm157_vm9, 1.0, %v2220_v38  ;;  %v1744_v60 = vsel %vm156_vm10, 1.0, %v2220_v38  ;;  %vm1105_vm9 = vcmask 15360  }
  0x92   :  { %v177_v61 = vpack.c.bf16 %v1745_v59, %v1744_v60  ;;  %1889 = vmatpush3.bf16.msra.mxu0 %v2091_v37 }
  0x93   :  { %2056 = vmatprep.subr.msk.bf16.mxu0 %vm391_vm11, %v357_v58 }
  0x94   :  { %v79_v62 = vpop.permute.xlu1 %78  ;;  %v76_v63 = vpop.permute.xlu0 %75 }
  0x95   :  { %vm99_vm12 = vcmp.eq.s32.totalorder %v2345_v40, %v79_v62  ;;  %vm98_vm13 = vcmp.eq.s32.totalorder %v2345_v40, %v76_v63  ;;  %1883 = vmatmul.mubr.msk.bf16.gmra.mxu0 %vm182_vm6, %v177_v61  ;;  %vm2221_vm6 = vmmov 0  }
  0x96   :  { %v1731_v0 = vsel %vm99_vm12, 1.0, %v2220_v38  ;;  %v1730_v4 = vsel %vm98_vm13, 1.0, %v2220_v38 }
  0x97   :  { %v122_v5 = vpack.c.bf16 %v1731_v0, %v1730_v4 }
  0x98   :  { %v82_v6 = vpop.permute.xlu1 %81  ;;  %v85_v7 = vpop.permute.xlu0 %84 }
  0x99   :  { %vm100_vm15 = vcmp.eq.s32.totalorder %v2345_v40, %v82_v6  ;;  %vm101_vm0 = vcmp.eq.s32.totalorder %v2345_v40, %v85_v7  ;;  %1890 = vmatprep.mubr.msk.bf16.mxu0 %vm276_vm14, %v122_v5 }
  0x9a   :  { %v1732_v8 = vsel %vm100_vm15, 1.0, %v2220_v38  ;;  %v1733_v9 = vsel %vm101_vm0, 1.0, %v2220_v38 }
  0x9b   :  { %v123_v10 = vpack.c.bf16 %v1733_v9, %v1732_v8 }
  0x9c   :  { %v88_v13 = vpop.permute.xlu1 %87  ;;  %v91_v14 = vpop.permute.xlu0 %90 }
  0x9d   :  { %vm102_vm2 = vcmp.eq.s32.totalorder %v2345_v40, %v88_v13  ;;  %vm103_vm3 = vcmp.eq.s32.totalorder %v2345_v40, %v91_v14  ;;  %1891 = vmatmul.mubr.msk.bf16.vlgmr.msra.gmra.mxu0 %vm276_vm14, %v123_v10 }
  0x9e   :  { %v1734_v15 = vsel %vm102_vm2, 1.0, %v2220_v38  ;;  %v1735_v16 = vsel %vm103_vm3, 1.0, %v2220_v38  ;;  %1899 = vmatpush3.bf16.msra.mxu0 %v393_v11  ;;  %1900 = vmatprep.mubr.msk.bf16.mxu0 %vm378_vm1, %v2310_v2 }
  0x9f   :  { %v124_v17 = vpack.c.bf16 %v1735_v16, %v1734_v15  ;;  %1924 = vmatprep.subr.bf16.mxu0 %v2220_v38 }
  0xa0   :  { %v94_v18 = vpop.permute.xlu1 %93  ;;  %v97_v19 = vpop.permute.xlu0 %96 }
  0xa1   :  { %vm104_vm4 = vcmp.eq.s32.totalorder %v2345_v40, %v94_v18  ;;  %vm105_vm5 = vcmp.eq.s32.totalorder %v2345_v40, %v97_v19  ;;  %1894 = vmatprep.mubr.msk.bf16.mxu1 %vm276_vm14, %v124_v17  ;;  %v1764_v40 = vld [vmem:[%s2702_s5] ss:$0 sm:$0xff]  ;;  %s2223_s5 = smov 64  }
  0xa2   :  { %v1736_v20 = vsel %vm104_vm4, 1.0, %v2220_v38  ;;  %v1737_v21 = vsel %vm105_vm5, 1.0, %v2220_v38 }
  0xa3   :  { %v125_v2 = vpack.c.bf16 %v1737_v21, %v1736_v20 }
  0xa5   :  { %1895 = vmatmul.mubr.msk.bf16.vlgmr.msra.gmra.mxu1 %vm276_vm14, %v125_v2  ;;  %1901 = vmatmul.mubr.msk.bf16.vlgmr.msra.gmra.mxu0 %vm378_vm1, %v2305_v1  ;;  %v2222_v1 = vmov 0  }
  0xa6   :  { %1909 = vmatpush3.bf16.msra.mxu1 %v2397_v22  ;;  %1904 = vmatprep.mubr.msk.bf16.mxu0 %vm378_vm1, %v2315_v3 }
  0xa7   :  { %1910 = vmatprep.subr.bf16.mxu1 %v2220_v38  ;;  %1912 = vmatprep.mubr.msk.bf16.mxu1 %vm2221_vm6, %v2220_v38 }
  0xa8   :  { %1925 = vmatpush3.bf16.msra.mxu0 %v2397_v22 }
  0xa9   :  { %1926 = vmatprep.subr.bf16.mxu0 %v2220_v38 }
  0xaa   :  { %1911 = vmatpush3.bf16.msra.mxu1 %v2406_v23 }
  0xab   :  { %1916 = vmatprep.subr.bf16.mxu1 %v2220_v38 }
  0xac   :  { %1927 = vmatpush3.bf16.msra.mxu0 %v2406_v23 }
  0xad   :  { %1905 = vmatmul.mubr.msk.bf16.gmra.mxu0 %vm378_vm1, %v2326_v12  ;;  %1913 = vmatmul.mubr.bf16.vlgmr.msra.gmra.mxu1 %v2222_v1 }
  0xae   :  { %1917 = vmatpush3.bf16.msra.mxu1 %v2397_v22  ;;  %1920 = vmatprep.mubr.msk.bf16.mxu1 %vm2221_vm6, %v2220_v38 }
  0xaf   :  { %1918 = vmatprep.subr.bf16.mxu1 %v2220_v38  ;;  %1928 = vmatprep.mubr.msk.bf16.mxu0 %vm2221_vm6, %v2220_v38 }
  0xb0   :  { %1940 = vmatprep.subr.bf16.mxu0 %v2220_v38 }
  0xb2   :  { %1919 = vmatpush3.bf16.msra.mxu1 %v2406_v23 }
  0xb3   :  { %1932 = vmatprep.subr.bf16.mxu1 %v2220_v38 }
 0x14d   :  { %v1880_v3 = vpop.f32.mrf.mxu0 }
 0x14f   :  { %v236_v12 = vpop.f32.mrf.mxu0 }
 0x151   :  { %v1881_v24 = vpop.f32.mrf.mxu0 }
 0x153   :  { %v239_v25 = vpop.f32.mrf.mxu0 }
 0x155   :  { %v1884_v26 = vpop.f32.mrf.mxu0 }
 0x157   :  { %v252_v27 = vpop.f32.mrf.mxu0 }
 0x159   :  { %v1885_v28 = vpop.f32.mrf.mxu0 }
 0x15b   :  { %v255_v29 = vpop.f32.mrf.mxu0 }
 0x15d   :  { %v1892_v30 = vpop.f32.mrf.mxu0 }
 0x15e   :  { %v335_v31 = vadd.f32 %v1892_v30, %v1880_v3 }
 0x15f   :  { %v326_v32 = vpop.f32.mrf.mxu0 }
 0x160   :  { %v327_v41 = vadd.f32 %v326_v32, %v236_v12 }
 0x161   :  { %v1893_v33 = vpop.f32.mrf.mxu0 }
 0x162   :  { %v338_v34 = vadd.f32 %v1893_v33, %v1881_v24 }
 0x163   :  { %v329_v35 = vpop.f32.mrf.mxu0 }
 0x164   :  { %v330_v36 = vadd.f32 %v329_v35, %v239_v25 }
 0x165   :  { %v1896_v37 = vpop.f32.mrf.mxu1  ;;  %v1902_v39 = vpop.f32.mrf.mxu0 }
 0x166   :  { %v351_v42 = vadd.f32 %v1896_v37, %v1884_v26  ;;  %v462_v43 = vadd.f32 %v1902_v39, %v335_v31 }
 0x167   :  { %v342_v44 = vpop.f32.mrf.mxu1  ;;  %v429_v45 = vpop.f32.mrf.mxu0 }
 0x168   :  { %v343_v46 = vadd.f32 %v342_v44, %v252_v27  ;;  %v460_v47 = vadd.f32 %v429_v45, %v327_v41  ;;  %v2432_v48 = vadd.f32 %v1764_v40, %v462_v43 }
 0x169   :  { %v1897_v49 = vpop.f32.mrf.mxu1  ;;  %v1903_v50 = vpop.f32.mrf.mxu0 }
 0x16a   :  { %v354_v51 = vadd.f32 %v1897_v49, %v1885_v28  ;;  %v463_v52 = vadd.f32 %v1903_v50, %v338_v34  ;;  %v475_v57 = vadd.f32 %v1764_v40, %v460_v47 }
 0x16b   :  { %v345_v53 = vpop.f32.mrf.mxu1  ;;  %v432_v54 = vpop.f32.mrf.mxu0 }
 0x16c   :  { %v346_v55 = vadd.f32 %v345_v53, %v255_v29  ;;  %v461_v56 = vadd.f32 %v432_v54, %v330_v36  ;;  %v2434_v58 = vadd.f32 %v1764_v40, %v463_v52 }
 0x16d   :  { %v1906_v59 = vpop.f32.mrf.mxu0  ;;  %v537_v60 = vpop.f32.mrf.mxu1 }
 0x16e   :  { %v466_v61 = vadd.f32 %v1906_v59, %v351_v42  ;;  %v543_v62 = vadd.f32 %v537_v60, %v475_v57  ;;  %v476_v63 = vadd.f32 %v1764_v40, %v461_v56 }
 0x16f   :  { %v445_v0 = vpop.f32.mrf.mxu0  ;;  %v1914_v4 = vpop.f32.mrf.mxu1 }
 0x170   :  { %2105 = vtanh.f32 %v543_v62  ;;  %v464_v5 = vadd.f32 %v445_v0, %v343_v46  ;;  %v2436_v6 = vadd.f32 %v1764_v40, %v466_v61  ;;  %v1767_v18 = vmul.f32 -1.442695, %v543_v62 }
 0x171   :  { %v1907_v7 = vpop.f32.mrf.mxu0  ;;  %v540_v8 = vpop.f32.mrf.mxu1 }
 0x172   :  { %v467_v9 = vadd.f32 %v1907_v7, %v354_v51  ;;  %v2438_v10 = vadd.f32 %v1764_v40, %v464_v5  ;;  %2107 = vpow2.f32 %v1767_v18 }
 0x173   :  { %v448_v11 = vpop.f32.mrf.mxu0  ;;  %v1915_v13 = vpop.f32.mrf.mxu1 }
 0x174   :  { %v465_v14 = vadd.f32 %v448_v11, %v346_v55  ;;  %v2440_v15 = vadd.f32 %v1764_v40, %v467_v9 }
 0x176   :  { %v2442_v16 = vadd.f32 %v1764_v40, %v465_v14 }
 0x17d   :  { %v2106_v17 = vpop.eup %2105 }
 0x17e   :  { %553 = vrot.lane.b32.xlu1 %v2106_v17, %s2223_s5 }
 0x17f   :  { %v2108_v19 = vpop.eup %2107 }
 0x180   :  { %v547_v20 = vadd.f32 1.0, %v2108_v19 }
 0x182   :  { %2109 = vrcp.f32 %v547_v20 }
 0x18f   :  { %v2110_v21 = vpop.eup %2109 }
 0x190   :  { %v551_v3 = vmul.f32 0.0, %v2110_v21 }
 0x1f0   :  { %v554_v2 = vpop.permute.xlu1 %553 }
 0x1f1   :  { %v556_v1 = vmul.f32 %v2110_v21, %v554_v2 }
 0x1f3   :  { %558 = vrot.lane.b32.xlu0 %v556_v1, %s2224_s26 }
 0x265   :  { %v559_v12 = vpop.permute.xlu0 %558 }
 0x266   :  { %v561_v24 = vadd.f32 %v559_v12, %v551_v3 }
 0x268   :  { %2111 = vtanh.f32 %v561_v24 }
 0x275   :  { %v2112_v25 = vpop.eup %2111 }
 0x276   :  { %564 = vrot.lane.b32.xlu1 %v2112_v25, %s2223_s5 }
 0x2e8   :  { %v565_v26 = vpop.permute.xlu1 %564 }
 0x2e9   :  { %v567_v27 = vmul.f32 %v2110_v21, %v565_v26 }
 0x2eb   :  { %v568_v28 = vpack.c.bf16 %v567_v27, %v567_v27 }
 0x2ed   :  { %570 = vrot.lane.b32.xlu0 %v568_v28, %s2224_s26 }
 0x35f   :  { %v571_v29 = vpop.permute.xlu0 %570 }
 0x360   :  { %1921 = vmatmul.mubr.msk.bf16.vlgmr.msra.gmra.mxu1 %vm499_vm7, %v571_v29 }
 0x361   :  { %1933 = vmatpush3.bf16.msra.mxu1 %v2397_v22  ;;  %1936 = vmatprep.mubr.msk.bf16.mxu1 %vm2221_vm6, %v2220_v38 }
 0x362   :  { %1934 = vmatprep.subr.bf16.mxu1 %v2220_v38 }
 0x365   :  { %1935 = vmatpush3.bf16.msra.mxu1 %v2406_v23 }
 0x366   :  { %1948 = vmatprep.subr.bf16.mxu1 %v2220_v38 }
 0x420   :  { %v609_v30 = vpop.f32.mrf.mxu1 }
 0x421   :  { %v615_v31 = vadd.f32 %v609_v30, %v476_v63 }
 0x422   :  { %v1922_v32 = vpop.f32.mrf.mxu1 }
 0x423   :  { %2113 = vtanh.f32 %v615_v31  ;;  %v1769_v36 = vmul.f32 -1.442695, %v615_v31 }
 0x424   :  { %v612_v33 = vpop.f32.mrf.mxu1 }
 0x425   :  { %2115 = vpow2.f32 %v1769_v36 }
 0x426   :  { %v1923_v34 = vpop.f32.mrf.mxu1 }
 0x430   :  { %v2114_v35 = vpop.eup %2113 }
 0x431   :  { %625 = vrot.lane.b32.xlu1 %v2114_v35, %s2223_s5 }
 0x432   :  { %v2116_v37 = vpop.eup %2115 }
 0x433   :  { %v619_v39 = vadd.f32 1.0, %v2116_v37 }
 0x435   :  { %2117 = vrcp.f32 %v619_v39 }
 0x442   :  { %v2118_v40 = vpop.eup %2117 }
 0x443   :  { %v623_v43 = vmul.f32 %v2118_v40, %v561_v24 }
 0x4a3   :  { %v626_v41 = vpop.permute.xlu1 %625 }
 0x4a4   :  { %v628_v42 = vmul.f32 %v2118_v40, %v626_v41 }
 0x4a6   :  { %630 = vrot.lane.b32.xlu0 %v628_v42, %s2224_s26 }
 0x518   :  { %v631_v44 = vpop.permute.xlu0 %630 }
 0x519   :  { %v633_v45 = vadd.f32 %v631_v44, %v623_v43 }
 0x51b   :  { %2119 = vtanh.f32 %v633_v45 }
 0x528   :  { %v2120_v46 = vpop.eup %2119 }
 0x529   :  { %636 = vrot.lane.b32.xlu1 %v2120_v46, %s2223_s5 }
 0x59b   :  { %v637_v47 = vpop.permute.xlu1 %636 }
 0x59c   :  { %v639_v49 = vmul.f32 %v2118_v40, %v637_v47 }
 0x59e   :  { %v640_v50 = vpack.c.bf16 %v639_v49, %v639_v49 }
 0x5a0   :  { %642 = vrot.lane.b32.xlu0 %v640_v50, %s2224_s26 }
 0x612   :  { %v643_v51 = vpop.permute.xlu0 %642 }
 0x613   :  { %1929 = vmatmul.mubr.msk.bf16.vlgmr.msra.gmra.mxu0 %vm499_vm7, %v643_v51 }
 0x614   :  { %1941 = vmatpush3.bf16.msra.mxu0 %v2397_v22  ;;  %1944 = vmatprep.mubr.msk.bf16.mxu0 %vm2221_vm6, %v2220_v38 }
 0x615   :  { %1942 = vmatprep.subr.bf16.mxu0 %v2220_v38 }
 0x618   :  { %1943 = vmatpush3.bf16.msra.mxu0 %v2406_v23 }
 0x619   :  { %1956 = vmatprep.subr.bf16.mxu0 %v2220_v38 }
 0x6d3   :  { %v681_v52 = vpop.f32.mrf.mxu0 }
 0x6d4   :  { %v687_v53 = vadd.f32 %v681_v52, %v2432_v48 }
 0x6d5   :  { %v1930_v54 = vpop.f32.mrf.mxu0 }
 0x6d6   :  { %2121 = vtanh.f32 %v687_v53  ;;  %v1771_v59 = vmul.f32 -1.442695, %v687_v53 }
 0x6d7   :  { %v684_v55 = vpop.f32.mrf.mxu0 }
 0x6d8   :  { %2123 = vpow2.f32 %v1771_v59 }
 0x6d9   :  { %v1931_v56 = vpop.f32.mrf.mxu0 }
 0x6e3   :  { %v2122_v57 = vpop.eup %2121 }
 0x6e4   :  { %697 = vrot.lane.b32.xlu1 %v2122_v57, %s2223_s5 }
 0x6e5   :  { %v2124_v60 = vpop.eup %2123 }
 0x6e6   :  { %v691_v61 = vadd.f32 1.0, %v2124_v60 }
 0x6e8   :  { %2125 = vrcp.f32 %v691_v61 }
 0x6f5   :  { %v2126_v62 = vpop.eup %2125 }
 0x6f6   :  { %v695_v4 = vmul.f32 %v2126_v62, %v633_v45 }
 0x756   :  { %v698_v63 = vpop.permute.xlu1 %697 }
 0x757   :  { %v700_v0 = vmul.f32 %v2126_v62, %v698_v63 }
 0x759   :  { %702 = vrot.lane.b32.xlu0 %v700_v0, %s2224_s26 }
 0x7cb   :  { %v703_v5 = vpop.permute.xlu0 %702 }
 0x7cc   :  { %v705_v48 = vadd.f32 %v703_v5, %v695_v4 }
 0x7ce   :  { %2127 = vtanh.f32 %v705_v48 }
 0x7db   :  { %v2128_v7 = vpop.eup %2127 }
 0x7dc   :  { %708 = vrot.lane.b32.xlu1 %v2128_v7, %s2223_s5 }
 0x84e   :  { %v709_v8 = vpop.permute.xlu1 %708 }
 0x84f   :  { %v711_v9 = vmul.f32 %v2126_v62, %v709_v8 }
 0x851   :  { %v712_v11 = vpack.c.bf16 %v711_v9, %v711_v9 }
 0x853   :  { %714 = vrot.lane.b32.xlu0 %v712_v11, %s2224_s26 }
 0x8c5   :  { %v715_v13 = vpop.permute.xlu0 %714 }
 0x8c6   :  { %1937 = vmatmul.mubr.msk.bf16.vlgmr.msra.gmra.mxu1 %vm499_vm7, %v715_v13 }
 0x8c7   :  { %1949 = vmatpush3.bf16.msra.mxu1 %v2397_v22  ;;  %1952 = vmatprep.mubr.msk.bf16.mxu1 %vm2221_vm6, %v2220_v38 }
 0x8c8   :  { %1950 = vmatprep.subr.bf16.mxu1 %v2220_v38 }
 0x8cb   :  { %1951 = vmatpush3.bf16.msra.mxu1 %v2406_v23 }
 0x8cc   :  { %1964 = vmatprep.subr.bf16.mxu1 %v2220_v38 }
 0x986   :  { %v753_v14 = vpop.f32.mrf.mxu1 }
 0x987   :  { %v759_v17 = vadd.f32 %v753_v14, %v2434_v58 }
 0x988   :  { %v1938_v18 = vpop.f32.mrf.mxu1 }
 0x989   :  { %2129 = vtanh.f32 %v759_v17  ;;  %v1773_v2 = vmul.f32 -1.442695, %v759_v17 }
 0x98a   :  { %v756_v19 = vpop.f32.mrf.mxu1 }
 0x98b   :  { %2131 = vpow2.f32 %v1773_v2 }
 0x98c   :  { %v1939_v20 = vpop.f32.mrf.mxu1 }
 0x996   :  { %v2130_v21 = vpop.eup %2129 }
 0x997   :  { %769 = vrot.lane.b32.xlu1 %v2130_v21, %s2223_s5 }
 0x998   :  { %v2132_v1 = vpop.eup %2131 }
 0x999   :  { %v763_v3 = vadd.f32 1.0, %v2132_v1 }
 0x99b   :  { %2133 = vrcp.f32 %v763_v3 }
 0x9a8   :  { %v2134_v12 = vpop.eup %2133 }
 0x9a9   :  { %v767_v26 = vmul.f32 %v2134_v12, %v705_v48 }
 0xa09   :  { %v770_v24 = vpop.permute.xlu1 %769 }
 0xa0a   :  { %v772_v25 = vmul.f32 %v2134_v12, %v770_v24 }
 0xa0c   :  { %774 = vrot.lane.b32.xlu0 %v772_v25, %s2224_s26 }
 0xa7e   :  { %v775_v27 = vpop.permute.xlu0 %774 }
 0xa7f   :  { %v777_v58 = vadd.f32 %v775_v27, %v767_v26 }
 0xa81   :  { %2135 = vtanh.f32 %v777_v58 }
 0xa8e   :  { %v2136_v28 = vpop.eup %2135 }
 0xa8f   :  { %780 = vrot.lane.b32.xlu1 %v2136_v28, %s2223_s5 }
 0xb01   :  { %v781_v29 = vpop.permute.xlu1 %780 }
 0xb02   :  { %v783_v30 = vmul.f32 %v2134_v12, %v781_v29 }
 0xb04   :  { %v784_v31 = vpack.c.bf16 %v783_v30, %v783_v30 }
 0xb06   :  { %786 = vrot.lane.b32.xlu0 %v784_v31, %s2224_s26 }
 0xb78   :  { %v787_v32 = vpop.permute.xlu0 %786 }
 0xb79   :  { %1945 = vmatmul.mubr.msk.bf16.vlgmr.msra.gmra.mxu0 %vm499_vm7, %v787_v32 }
 0xb7a   :  { %1957 = vmatpush3.bf16.msra.mxu0 %v2397_v22  ;;  %1960 = vmatprep.mubr.msk.bf16.mxu0 %vm2221_vm6, %v2220_v38 }
 0xb7b   :  { %1958 = vmatprep.subr.bf16.mxu0 %v2220_v38 }
 0xb7e   :  { %1959 = vmatpush3.bf16.msra.mxu0 %v2406_v23 }
 0xb7f   :  { %1972 = vmatprep.subr.bf16.mxu0 %v2220_v38 }
 0xc39   :  { %v825_v33 = vpop.f32.mrf.mxu0 }
 0xc3a   :  { %v831_v34 = vadd.f32 %v825_v33, %v2438_v10 }
 0xc3b   :  { %v1946_v35 = vpop.f32.mrf.mxu0 }
 0xc3c   :  { %2137 = vtanh.f32 %v831_v34  ;;  %v1775_v40 = vmul.f32 -1.442695, %v831_v34 }
 0xc3d   :  { %v828_v36 = vpop.f32.mrf.mxu0 }
 0xc3e   :  { %2139 = vpow2.f32 %v1775_v40 }
 0xc3f   :  { %v1947_v37 = vpop.f32.mrf.mxu0 }
 0xc49   :  { %v2138_v39 = vpop.eup %2137 }
 0xc4a   :  { %841 = vrot.lane.b32.xlu1 %v2138_v39, %s2223_s5 }
 0xc4b   :  { %v2140_v41 = vpop.eup %2139 }
 0xc4c   :  { %v835_v42 = vadd.f32 1.0, %v2140_v41 }
 0xc4e   :  { %2141 = vrcp.f32 %v835_v42 }
 0xc5b   :  { %v2142_v43 = vpop.eup %2141 }
 0xc5c   :  { %v839_v46 = vmul.f32 %v2142_v43, %v777_v58 }
 0xcbc   :  { %v842_v44 = vpop.permute.xlu1 %841 }
 0xcbd   :  { %v844_v45 = vmul.f32 %v2142_v43, %v842_v44 }
 0xcbf   :  { %846 = vrot.lane.b32.xlu0 %v844_v45, %s2224_s26 }
 0xd31   :  { %v847_v47 = vpop.permute.xlu0 %846 }
 0xd32   :  { %v849_v10 = vadd.f32 %v847_v47, %v839_v46  ;;  %v2524_v46 = vld [vmem:[%s2703_s8 + $0x8] sm:$0xff]   ;;  %v2530_v47 = vld [vmem:[%s2703_s8] sm:$0xff]  }
 0xd34   :  { %2143 = vtanh.f32 %v849_v10 }
 0xd41   :  { %v2144_v49 = vpop.eup %2143 }
 0xd42   :  { %852 = vrot.lane.b32.xlu1 %v2144_v49, %s2223_s5 }
 0xdb4   :  { %v853_v50 = vpop.permute.xlu1 %852 }
 0xdb5   :  { %v855_v51 = vmul.f32 %v2142_v43, %v853_v50 }
 0xdb7   :  { %v856_v52 = vpack.c.bf16 %v855_v51, %v855_v51 }
 0xdb9   :  { %858 = vrot.lane.b32.xlu0 %v856_v52, %s2224_s26 }
 0xe2b   :  { %v859_v53 = vpop.permute.xlu0 %858 }
 0xe2c   :  { %1953 = vmatmul.mubr.msk.bf16.vlgmr.msra.gmra.mxu1 %vm499_vm7, %v859_v53  ;;  %v2547_v53 = vld [vmem:[%s2704_s10] ss:$0 sm:$0xff] }
 0xe2d   :  { %1965 = vmatpush3.bf16.msra.mxu1 %v2397_v22  ;;  %1968 = vmatprep.mubr.msk.bf16.mxu1 %vm2221_vm6, %v2220_v38 }
 0xe2e   :  { %1966 = vmatprep.subr.bf16.mxu1 %v2220_v38 }
 0xe31   :  { %1967 = vmatpush3.bf16.msra.mxu1 %v2406_v23 }
 0xe32   :  { %1986 = vmatprep.subr.bf16.mxu1 %v2220_v38 }
 0xeec   :  { %v897_v54 = vpop.f32.mrf.mxu1 }
 0xeed   :  { %v903_v55 = vadd.f32 %v897_v54, %v2442_v16 }
 0xeee   :  { %v1954_v56 = vpop.f32.mrf.mxu1 }
 0xeef   :  { %2145 = vtanh.f32 %v903_v55  ;;  %v1777_v22 = vmul.f32 -1.442695, %v903_v55 }
 0xef0   :  { %v900_v57 = vpop.f32.mrf.mxu1 }
 0xef1   :  { %2147 = vpow2.f32 %v1777_v22 }
 0xef2   :  { %v1955_v59 = vpop.f32.mrf.mxu1 }
 0xefc   :  { %v2146_v60 = vpop.eup %2145 }
 0xefd   :  { %913 = vrot.lane.b32.xlu1 %v2146_v60, %s2223_s5 }
 0xefe   :  { %v2148_v61 = vpop.eup %2147 }
 0xeff   :  { %v907_v62 = vadd.f32 1.0, %v2148_v61 }
 0xf01   :  { %2149 = vrcp.f32 %v907_v62 }
 0xf0e   :  { %v2150_v63 = vpop.eup %2149 }
 0xf0f   :  { %v911_v4 = vmul.f32 %v2150_v63, %v849_v10 }
 0xf6f   :  { %v914_v0 = vpop.permute.xlu1 %913 }
 0xf70   :  { %v916_v23 = vmul.f32 %v2150_v63, %v914_v0 }
 0xf72   :  { %918 = vrot.lane.b32.xlu0 %v916_v23, %s2224_s26 }
 0xfe4   :  { %v919_v5 = vpop.permute.xlu0 %918 }
 0xfe5   :  { %v921_v16 = vadd.f32 %v919_v5, %v911_v4 }
 0xfe7   :  { %2151 = vtanh.f32 %v921_v16 }
 0xff4   :  { %v2152_v48 = vpop.eup %2151 }
 0xff5   :  { %924 = vrot.lane.b32.xlu1 %v2152_v48, %s2223_s5  ;;  %v1089_v48 = vld [vmem:[%s2705_s7] sm:$0x1] }
0x1067   :  { %v925_v7 = vpop.permute.xlu1 %924 }
0x1068   :  { %v927_v8 = vmul.f32 %v2150_v63, %v925_v7  ;;  %v1117_v7 = vsel %vm1115_vm8, %v1089_v48, 0 }
0x106a   :  { %v928_v9 = vpack.c.bf16 %v927_v8, %v927_v8  ;;  %v2096_v8 = vld [vmem:[%s2706_s1] sm:$0xff]  }
0x106c   :  { %930 = vrot.lane.b32.xlu0 %v928_v9, %s2224_s26 }
0x10de   :  { %v931_v11 = vpop.permute.xlu0 %930 }
0x10df   :  { %1961 = vmatmul.mubr.msk.bf16.vlgmr.msra.gmra.mxu0 %vm499_vm7, %v931_v11 }
0x10e0   :  { %1974 = vmatprep.mubr.msk.bf16.mxu0 %vm2221_vm6, %v2220_v38  ;;  %1973 = vmatpush3.bf16.msra.mxu0 %v1117_v7 }
0x10e1   :  { %2010 = vmatprep.subr.bf16.mxu0 %v2220_v38 }
0x10e7   :  { %1975 = vmatmul.mubr.msk.bf16.vlgmr.msra.gmra.mxu0 %vm1105_vm9, %v2096_v8 }
0x10e8   :  { %1978 = vmatprep.mubr.msk.bf16.mxu0 %vm2221_vm6, %v2220_v38  ;;  %2011 = vmatpush3.bf16.msra.mxu0 %v2524_v46 }
0x10e9   :  { %2012 = vmatprep.subr.bf16.mxu0 %v2220_v38 }
0x10ec   :  { %2013 = vmatpush3.bf16.msra.mxu0 %v2530_v47 }
0x10ed   :  { %2026 = vmatprep.subr.bf16.mxu0 %v2220_v38 }
0x119f   :  { %v969_v13 = vpop.f32.mrf.mxu0 }
0x11a0   :  { %v975_v14 = vadd.f32 %v969_v13, %v2436_v6 }
0x11a1   :  { %v1962_v17 = vpop.f32.mrf.mxu0 }
0x11a2   :  { %2153 = vtanh.f32 %v975_v14  ;;  %v1779_v21 = vmul.f32 -1.442695, %v975_v14 }
0x11a3   :  { %v972_v18 = vpop.f32.mrf.mxu0 }
0x11a4   :  { %2155 = vpow2.f32 %v1779_v21 }
0x11a5   :  { %v1963_v19 = vpop.f32.mrf.mxu0 }
0x11a7   :  { %v1153_v17 = vpop.f32.mrf.mxu0 }
0x11a9   :  { %v1976_v18 = vpop.f32.mrf.mxu0 }
0x11ab   :  { %v1155_v19 = vpop.f32.mrf.mxu0 }
0x11af   :  { %v2154_v20 = vpop.eup %2153 }
0x11b0   :  { %985 = vrot.lane.b32.xlu1 %v2154_v20, %s2223_s5  ;;  %v1977_v20 = vpop.f32.mrf.mxu0 }
0x11b1   :  { %v2156_v2 = vpop.eup %2155 }
0x11b2   :  { %v979_v1 = vadd.f32 1.0, %v2156_v2  ;;  %v1156_v2 = vadd.f32 %v2547_v53, %v1155_v19 }
0x11b4   :  { %2157 = vrcp.f32 %v979_v1 }
0x11c1   :  { %v2158_v3 = vpop.eup %2157 }
0x11c2   :  { %v983_v25 = vmul.f32 %v2158_v3, %v921_v16 }
0x1222   :  { %v986_v12 = vpop.permute.xlu1 %985 }
0x1223   :  { %v988_v24 = vmul.f32 %v2158_v3, %v986_v12 }
0x1225   :  { %990 = vrot.lane.b32.xlu0 %v988_v24, %s2224_s26 }
0x1297   :  { %v991_v26 = vpop.permute.xlu0 %990 }
0x1298   :  { %v993_v6 = vadd.f32 %v991_v26, %v983_v25 }
0x129a   :  { %2159 = vtanh.f32 %v993_v6 }
0x12a7   :  { %v2160_v27 = vpop.eup %2159 }
0x12a8   :  { %996 = vrot.lane.b32.xlu1 %v2160_v27, %s2223_s5 }
0x131a   :  { %v997_v58 = vpop.permute.xlu1 %996 }
0x131b   :  { %v999_v28 = vmul.f32 %v2158_v3, %v997_v58 }
0x131d   :  { %v1000_v29 = vpack.c.bf16 %v999_v28, %v999_v28 }
0x131f   :  { %1002 = vrot.lane.b32.xlu0 %v1000_v29, %s2224_s26 }
0x1391   :  { %v1003_v30 = vpop.permute.xlu0 %1002 }
0x1392   :  { %1969 = vmatmul.mubr.msk.bf16.vlgmr.msra.gmra.mxu1 %vm499_vm7, %v1003_v30 }
0x1393   :  { %1990 = vmatprep.mubr.msk.bf16.mxu1 %vm2221_vm6, %v2220_v38  ;;  %1987 = vmatpush3.bf16.msra.mxu1 %v2524_v46 }
0x1394   :  { %1988 = vmatprep.subr.bf16.mxu1 %v2220_v38 }
0x1397   :  { %1989 = vmatpush3.bf16.msra.mxu1 %v2530_v47 }
0x1398   :  { %1994 = vmatprep.subr.bf16.mxu1 %v2220_v38 }
0x1452   :  { %v1041_v31 = vpop.f32.mrf.mxu1 }
0x1453   :  { %v1047_v32 = vadd.f32 %v1041_v31, %v2440_v15 }
0x1454   :  { %v1970_v33 = vpop.f32.mrf.mxu1 }
0x1455   :  { %2161 = vtanh.f32 %v1047_v32  ;;  %v1781_v37 = vmul.f32 -1.442695, %v1047_v32 }
0x1456   :  { %v1044_v34 = vpop.f32.mrf.mxu1 }
0x1457   :  { %2163 = vpow2.f32 %v1781_v37  ;;  %v2097_v34 = vld [vmem:[%s2706_s1 + $0x8] sm:$0xff]  }
0x1458   :  { %v1971_v35 = vpop.f32.mrf.mxu1  ;;  %1979 = vmatmul.mubr.msk.bf16.gmra.mxu0 %vm1105_vm9, %v2097_v34 }
0x1459   :  { %1982 = vmatprep.mubr.msk.bf16.mxu0 %vm2221_vm6, %v2220_v38 }
0x1462   :  { %v2162_v36 = vpop.eup %2161 }
0x1463   :  { %1057 = vrot.lane.b32.xlu1 %v2162_v36, %s2223_s5 }
0x1464   :  { %v2164_v39 = vpop.eup %2163 }
0x1465   :  { %v1051_v40 = vadd.f32 1.0, %v2164_v39 }
0x1467   :  { %2165 = vrcp.f32 %v1051_v40 }
0x1474   :  { %v2166_v41 = vpop.eup %2165 }
0x1475   :  { %v1055_v44 = vmul.f32 %v2166_v41, %v993_v6 }
0x14d5   :  { %v1058_v42 = vpop.permute.xlu1 %1057 }
0x14d6   :  { %v1060_v43 = vmul.f32 %v2166_v41, %v1058_v42 }
0x14d8   :  { %1062 = vrot.lane.b32.xlu0 %v1060_v43, %s2224_s26 }
0x1518   :  { %v1160_v40 = vpop.f32.mrf.mxu0 }
0x154a   :  { %v1063_v45 = vpop.permute.xlu0 %1062 }
0x154b   :  { %v1065_v15 = vadd.f32 %v1063_v45, %v1055_v44  ;;  %v1161_v45 = vadd.f32 %v2547_v53, %v1160_v40 }
0x154d   :  { %2167 = vtanh.f32 %v1065_v15 }
0x155a   :  { %v2168_v10 = vpop.eup %2167 }
0x155b   :  { %1068 = vrot.lane.b32.xlu1 %v2168_v10, %s2223_s5 }
0x15cd   :  { %v1069_v49 = vpop.permute.xlu1 %1068 }
0x15ce   :  { %v1071_v50 = vmul.f32 %v2166_v41, %v1069_v49  ;;  %v1980_v41 = vpop.f32.mrf.mxu0 }
0x15d0   :  { %v1175_v51 = vpack.c.bf16 %v1071_v50, %v1071_v50  ;;  %v1163_v42 = vpop.f32.mrf.mxu0 }
0x15d2   :  { %1177 = vrot.lane.b32.xlu0 %v1175_v51, %s2224_s26  ;;  %v1981_v43 = vpop.f32.mrf.mxu0 }
0x1644   :  { %v1178_v52 = vpop.permute.xlu0 %1177 }
0x1645   :  { %1991 = vmatmul.mubr.msk.bf16.vlgmr.msra.gmra.mxu1 %vm499_vm7, %v1178_v52 }
0x1646   :  { %1995 = vmatpush3.bf16.msra.mxu1 %v2524_v46  ;;  %1998 = vmatprep.mubr.msk.bf16.mxu1 %vm2221_vm6, %v2220_v38 }
0x1647   :  { %1996 = vmatprep.subr.bf16.mxu1 %v2220_v38 }
0x164a   :  { %1997 = vmatpush3.bf16.msra.mxu1 %v2530_v47 }
0x164b   :  { %2002 = vmatprep.subr.bf16.mxu1 %v2220_v38 }
0x1705   :  { %v1228_v54 = vpop.f32.mrf.mxu1 }
0x1706   :  { %v1234_v55 = vadd.f32 %v2547_v53, %v1228_v54 }
0x1707   :  { %v1992_v56 = vpop.f32.mrf.mxu1 }
0x1708   :  { %2169 = vtanh.f32 %v1234_v55  ;;  %v1792_v22 = vmul.f32 -1.442695, %v1234_v55 }
0x1709   :  { %v1231_v57 = vpop.f32.mrf.mxu1 }
0x170a   :  { %2171 = vpow2.f32 %v1792_v22 }
0x170b   :  { %v1993_v59 = vpop.f32.mrf.mxu1 }
0x1715   :  { %v2170_v60 = vpop.eup %2169 }
0x1716   :  { %1244 = vrot.lane.b32.xlu1 %v2170_v60, %s2223_s5 }
0x1717   :  { %v2172_v61 = vpop.eup %2171 }
0x1718   :  { %v1238_v62 = vadd.f32 1.0, %v2172_v61 }
0x171a   :  { %2173 = vrcp.f32 %v1238_v62 }
0x1727   :  { %v2174_v63 = vpop.eup %2173 }
0x1728   :  { %v1242_v4 = vmul.f32 %v2174_v63, %v1065_v15 }
0x1788   :  { %v1245_v0 = vpop.permute.xlu1 %1244 }
0x1789   :  { %v1247_v23 = vmul.f32 %v2174_v63, %v1245_v0 }
0x178b   :  { %1249 = vrot.lane.b32.xlu0 %v1247_v23, %s2224_s26 }
0x17fd   :  { %v1250_v5 = vpop.permute.xlu0 %1249 }
0x17fe   :  { %v1252_v16 = vadd.f32 %v1250_v5, %v1242_v4 }
0x1800   :  { %2175 = vtanh.f32 %v1252_v16 }
0x180d   :  { %v2176_v9 = vpop.eup %2175 }
0x180e   :  { %1255 = vrot.lane.b32.xlu1 %v2176_v9, %s2223_s5 }
0x1880   :  { %v1256_v11 = vpop.permute.xlu1 %1255 }
0x1881   :  { %v2567_v13 = vmul.f32 %v2174_v63, %v1256_v11  ;;  %v2098_v63 = vld [vmem:[%s2706_s1 + $0x10] sm:$0xff]   ;;  %v1164_v11 = vadd.f32 %v2547_v53, %v1163_v42 }
0x1882   :  { %1983 = vmatmul.mubr.msk.bf16.gmra.mxu0 %vm1105_vm9, %v2098_v63 }
0x1883   :  { %v1259_v14 = vpack.c.bf16 %v2567_v13, %v2567_v13  ;;  %2014 = vmatprep.mubr.msk.bf16.mxu0 %vm2221_vm6, %v2220_v38 }
0x1885   :  { %1261 = vrot.lane.b32.xlu0 %v1259_v14, %s2224_s26 }
0x18f7   :  { %v1262_v21 = vpop.permute.xlu0 %1261 }
0x18f8   :  { %1999 = vmatmul.mubr.msk.bf16.vlgmr.msra.gmra.mxu1 %vm499_vm7, %v1262_v21 }
0x18f9   :  { %2003 = vmatpush3.bf16.msra.mxu1 %v2524_v46  ;;  %2006 = vmatprep.mubr.msk.bf16.mxu1 %vm2221_vm6, %v2220_v38 }
0x18fa   :  { %2004 = vmatprep.subr.bf16.mxu1 %v2220_v38 }
0x18fd   :  { %2005 = vmatpush3.bf16.msra.mxu1 %v2530_v47 }
0x18fe   :  { %2018 = vmatprep.subr.bf16.mxu1 %v2220_v38 }
0x19b8   :  { %v1300_v1 = vpop.f32.mrf.mxu1 }
0x19b9   :  { %v1306_v3 = vadd.f32 %v1300_v1, %v1156_v2 }
0x19ba   :  { %v2000_v12 = vpop.f32.mrf.mxu1 }
0x19bb   :  { %2177 = vtanh.f32 %v1306_v3  ;;  %v1794_v6 = vmul.f32 -1.442695, %v1306_v3 }
0x19bc   :  { %v1303_v24 = vpop.f32.mrf.mxu1 }
0x19bd   :  { %2179 = vpow2.f32 %v1794_v6 }
0x19be   :  { %v2001_v25 = vpop.f32.mrf.mxu1 }
0x19c8   :  { %v2178_v26 = vpop.eup %2177 }
0x19c9   :  { %1316 = vrot.lane.b32.xlu1 %v2178_v26, %s2223_s5 }
0x19ca   :  { %v2180_v27 = vpop.eup %2179 }
0x19cb   :  { %v1310_v58 = vadd.f32 1.0, %v2180_v27 }
0x19cd   :  { %2181 = vrcp.f32 %v1310_v58 }
0x19da   :  { %v2182_v28 = vpop.eup %2181 }
0x19db   :  { %v1314_v31 = vmul.f32 %v2182_v28, %v1252_v16  ;;  %v1168_v16 = vpop.f32.mrf.mxu0 }
0x19dd   :  { %v1984_v48 = vpop.f32.mrf.mxu0 }
0x19df   :  { %v2616_v7 = vpop.f32.mrf.mxu0 }
0x19e1   :  { %v1985_v8 = vpop.f32.mrf.mxu0 }
0x1a3b   :  { %v1317_v29 = vpop.permute.xlu1 %1316 }
0x1a3c   :  { %v1319_v30 = vmul.f32 %v2182_v28, %v1317_v29 }
0x1a3e   :  { %1321 = vrot.lane.b32.xlu0 %v1319_v30, %s2224_s26  ;;  %v1169_v30 = vadd.f32 %v2547_v53, %v1168_v16 }
0x1ab0   :  { %v1322_v32 = vpop.permute.xlu0 %1321 }
0x1ab1   :  { %v1324_v33 = vadd.f32 %v1322_v32, %v1314_v31 }
0x1ab3   :  { %2183 = vtanh.f32 %v1324_v33 }
0x1ac0   :  { %v2184_v35 = vpop.eup %2183 }
0x1ac1   :  { %1327 = vrot.lane.b32.xlu1 %v2184_v35, %s2223_s5 }
0x1b33   :  { %v1328_v36 = vpop.permute.xlu1 %1327 }
0x1b34   :  { %v2589_v37 = vmul.f32 %v2182_v28, %v1328_v36 }
0x1b36   :  { %v1331_v39 = vpack.c.bf16 %v2589_v37, %v2589_v37 }
0x1b38   :  { %1333 = vrot.lane.b32.xlu0 %v1331_v39, %s2224_s26 }
0x1baa   :  { %v1334_v44 = vpop.permute.xlu0 %1333 }
0x1bab   :  { %2007 = vmatmul.mubr.msk.bf16.vlgmr.msra.gmra.mxu1 %vm499_vm7, %v1334_v44 }
0x1bac   :  { %2019 = vmatpush3.bf16.msra.mxu1 %v2524_v46  ;;  %2022 = vmatprep.mubr.msk.bf16.mxu1 %vm2221_vm6, %v2220_v38 }
0x1bad   :  { %2020 = vmatprep.subr.bf16.mxu1 %v2220_v38 }
0x1bb0   :  { %2021 = vmatpush3.bf16.msra.mxu1 %v2530_v47 }
0x1bb1   :  { %2034 = vmatprep.subr.bf16.mxu1 %v2220_v38 }
0x1c6b   :  { %v1372_v15 = vpop.f32.mrf.mxu1 }
0x1c6c   :  { %v1378_v10 = vadd.f32 %v1372_v15, %v1161_v45 }
0x1c6d   :  { %v2008_v49 = vpop.f32.mrf.mxu1 }
0x1c6e   :  { %2185 = vtanh.f32 %v1378_v10  ;;  %v1796_v54 = vmul.f32 -1.442695, %v1378_v10 }
0x1c6f   :  { %v1375_v50 = vpop.f32.mrf.mxu1 }
0x1c70   :  { %2187 = vpow2.f32 %v1796_v54 }
0x1c71   :  { %v2009_v51 = vpop.f32.mrf.mxu1 }
0x1c7b   :  { %v2186_v52 = vpop.eup %2185 }
0x1c7c   :  { %1388 = vrot.lane.b32.xlu1 %v2186_v52, %s2223_s5 }
0x1c7d   :  { %v2188_v55 = vpop.eup %2187 }
0x1c7e   :  { %v1382_v56 = vadd.f32 1.0, %v2188_v55  ;;  %v1172_v55 = vadd.f32 %v2547_v53, %v2616_v7  ;;  %v1619_v7 = vpack.c.bf16 %v2589_v37, %v2567_v13 }
0x1c80   :  { %2189 = vrcp.f32 %v1382_v56 }
0x1c8d   :  { %v2190_v57 = vpop.eup %2189 }
0x1c8e   :  { %v1386_v22 = vmul.f32 %v2190_v57, %v1324_v33 }
0x1cee   :  { %v1389_v59 = vpop.permute.xlu1 %1388 }
0x1cef   :  { %v1391_v60 = vmul.f32 %v2190_v57, %v1389_v59 }
0x1cf1   :  { %1393 = vrot.lane.b32.xlu0 %v1391_v60, %s2224_s26 }
0x1d63   :  { %v1394_v61 = vpop.permute.xlu0 %1393 }
0x1d64   :  { %v1396_v62 = vadd.f32 %v1394_v61, %v1386_v22  ;;  %v2099_v61 = vld [vmem:[%s2707_s12 + $0x8] sm:$0xff]  }
0x1d66   :  { %2191 = vtanh.f32 %v1396_v62 }
0x1d73   :  { %v2192_v0 = vpop.eup %2191 }
0x1d74   :  { %1399 = vrot.lane.b32.xlu1 %v2192_v0, %s2223_s5 }
0x1de6   :  { %v1400_v23 = vpop.permute.xlu1 %1399 }
0x1de7   :  { %v2611_v4 = vmul.f32 %v2190_v57, %v1400_v23  ;;  %v2100_v23 = vld [vmem:[%s2707_s12] sm:$0xff]  }
0x1de9   :  { %v1403_v5 = vpack.c.bf16 %v2611_v4, %v2611_v4 }
0x1deb   :  { %1405 = vrot.lane.b32.xlu0 %v1403_v5, %s2224_s26 }
0x1e5d   :  { %v1406_v9 = vpop.permute.xlu0 %1405 }
0x1e5e   :  { %2015 = vmatmul.mubr.msk.bf16.vlgmr.msra.gmra.mxu0 %vm499_vm7, %v1406_v9 }
0x1e5f   :  { %2027 = vmatpush3.bf16.msra.mxu0 %v2524_v46  ;;  %2030 = vmatprep.mubr.msk.bf16.mxu0 %vm2221_vm6, %v2220_v38 }
0x1e60   :  { %2028 = vmatprep.subr.bf16.mxu0 %v2220_v38 }
0x1e63   :  { %2029 = vmatpush3.bf16.msra.mxu0 %v2530_v47 }
0x1f1e   :  { %v1444_v14 = vpop.f32.mrf.mxu0 }
0x1f1f   :  { %v1450_v17 = vadd.f32 %v1444_v14, %v1164_v11 }
0x1f20   :  { %v2016_v18 = vpop.f32.mrf.mxu0 }
0x1f21   :  { %2193 = vtanh.f32 %v1450_v17  ;;  %v1798_v2 = vmul.f32 -1.442695, %v1450_v17 }
0x1f22   :  { %v1447_v19 = vpop.f32.mrf.mxu0 }
0x1f23   :  { %2195 = vpow2.f32 %v1798_v2 }
0x1f24   :  { %v2017_v20 = vpop.f32.mrf.mxu0 }
0x1f2e   :  { %v2194_v21 = vpop.eup %2193 }
0x1f2f   :  { %1460 = vrot.lane.b32.xlu1 %v2194_v21, %s2223_s5  ;;  %v1803_v21 = vld [vmem:[%s2708_s13] ss:$0 sm:$0xff] }
0x1f30   :  { %v2196_v46 = vpop.eup %2195 }
0x1f31   :  { %v1454_v1 = vadd.f32 1.0, %v2196_v46 }
0x1f33   :  { %2197 = vrcp.f32 %v1454_v1 }
0x1f40   :  { %v2198_v3 = vpop.eup %2197 }
0x1f41   :  { %v1458_v47 = vmul.f32 %v2198_v3, %v1396_v62 }
0x1fa1   :  { %v1461_v12 = vpop.permute.xlu1 %1460 }
0x1fa2   :  { %v1463_v24 = vmul.f32 %v2198_v3, %v1461_v12 }
0x1fa4   :  { %1465 = vrot.lane.b32.xlu0 %v1463_v24, %s2224_s26 }
0x2016   :  { %v1466_v25 = vpop.permute.xlu0 %1465 }
0x2017   :  { %v1468_v26 = vadd.f32 %v1466_v25, %v1458_v47 }
0x2019   :  { %2199 = vtanh.f32 %v1468_v26 }
0x2026   :  { %v2200_v6 = vpop.eup %2199 }
0x2027   :  { %1471 = vrot.lane.b32.xlu1 %v2200_v6, %s2223_s5 }
0x2099   :  { %v1472_v27 = vpop.permute.xlu1 %1471 }
0x209a   :  { %v2628_v58 = vmul.f32 %v2198_v3, %v1472_v27 }
0x209c   :  { %v1475_v28 = vpack.c.bf16 %v2628_v58, %v2628_v58  ;;  %v1620_v18 = vpack.c.bf16 %v2628_v58, %v2611_v4 }
0x209e   :  { %1477 = vrot.lane.b32.xlu0 %v1475_v28, %s2224_s26 }
0x2110   :  { %v1478_v29 = vpop.permute.xlu0 %1477 }
0x2111   :  { %2023 = vmatmul.mubr.msk.bf16.vlgmr.msra.gmra.mxu1 %vm499_vm7, %v1478_v29 }
0x2112   :  { %2038 = vmatprep.mubr.msk.bf16.mxu1 %vm2221_vm6, %v2220_v38  ;;  %2035 = vmatpush3.bf16.msra.mxu1 %v2099_v61 }
0x2113   :  { %2036 = vmatprep.subr.bf16.mxu1 %v2220_v38 }
0x2116   :  { %2037 = vmatpush3.bf16.msra.mxu1 %v2100_v23 }
0x21d1   :  { %v1516_v31 = vpop.f32.mrf.mxu1 }
0x21d2   :  { %v1522_v32 = vadd.f32 %v1516_v31, %v1169_v30 }
0x21d3   :  { %v2024_v33 = vpop.f32.mrf.mxu1 }
0x21d4   :  { %2201 = vtanh.f32 %v1522_v32  ;;  %v1800_v39 = vmul.f32 -1.442695, %v1522_v32 }
0x21d5   :  { %v1519_v34 = vpop.f32.mrf.mxu1 }
0x21d6   :  { %2203 = vpow2.f32 %v1800_v39 }
0x21d7   :  { %v2025_v35 = vpop.f32.mrf.mxu1 }
0x21e1   :  { %v2202_v36 = vpop.eup %2201 }
0x21e2   :  { %1532 = vrot.lane.b32.xlu1 %v2202_v36, %s2223_s5 }
0x21e3   :  { %v2204_v40 = vpop.eup %2203 }
0x21e4   :  { %v1526_v41 = vadd.f32 1.0, %v2204_v40 }
0x21e6   :  { %2205 = vrcp.f32 %v1526_v41 }
0x21f3   :  { %v2206_v42 = vpop.eup %2205 }
0x21f4   :  { %v1530_v45 = vmul.f32 %v2206_v42, %v1468_v26 }
0x2254   :  { %v1533_v43 = vpop.permute.xlu1 %1532 }
0x2255   :  { %v1535_v44 = vmul.f32 %v2206_v42, %v1533_v43 }
0x2257   :  { %1537 = vrot.lane.b32.xlu0 %v1535_v44, %s2224_s26 }
0x22c9   :  { %v1538_v15 = vpop.permute.xlu0 %1537 }
0x22ca   :  { %v1540_v10 = vadd.f32 %v1538_v15, %v1530_v45 }
0x22cc   :  { %2207 = vtanh.f32 %v1540_v10 }
0x22d9   :  { %v2208_v49 = vpop.eup %2207 }
0x22da   :  { %1543 = vrot.lane.b32.xlu1 %v2208_v49, %s2223_s5 }
0x234c   :  { %v1544_v50 = vpop.permute.xlu1 %1543 }
0x234d   :  { %v1546_v51 = vmul.f32 %v2206_v42, %v1544_v50 }
0x234f   :  { %v1547_v52 = vpack.c.bf16 %v1546_v51, %v1546_v51 }
0x2351   :  { %1549 = vrot.lane.b32.xlu0 %v1547_v52, %s2224_s26 }
0x23c3   :  { %v1550_v54 = vpop.permute.xlu0 %1549 }
0x23c4   :  { %2031 = vmatmul.mubr.msk.bf16.vlgmr.msra.gmra.mxu0 %vm499_vm7, %v1550_v54 }
0x2484   :  { %v1588_v56 = vpop.f32.mrf.mxu0 }
0x2485   :  { %v1594_v57 = vadd.f32 %v1588_v56, %v1172_v55 }
0x2486   :  { %v2032_v59 = vpop.f32.mrf.mxu0 }
0x2487   :  { %2209 = vtanh.f32 %v1594_v57  ;;  %v1802_v63 = vmul.f32 -1.442695, %v1594_v57 }
0x2488   :  { %v1591_v60 = vpop.f32.mrf.mxu0 }
0x2489   :  { %2211 = vpow2.f32 %v1802_v63 }
0x248a   :  { %v2033_v22 = vpop.f32.mrf.mxu0 }
0x2494   :  { %v2210_v62 = vpop.eup %2209 }
0x2495   :  { %1604 = vrot.lane.b32.xlu1 %v2210_v62, %s2223_s5 }
0x2496   :  { %v2212_v0 = vpop.eup %2211 }
0x2497   :  { %v1598_v53 = vadd.f32 1.0, %v2212_v0 }
0x2499   :  { %2213 = vrcp.f32 %v1598_v53 }
0x24a6   :  { %v2214_v5 = vpop.eup %2213 }
0x24a7   :  { %v1602_v8 = vmul.f32 %v2214_v5, %v1540_v10 }
0x2507   :  { %v1605_v16 = vpop.permute.xlu1 %1604 }
0x2508   :  { %v1607_v48 = vmul.f32 %v2214_v5, %v1605_v16 }
0x250a   :  { %1609 = vrot.lane.b32.xlu0 %v1607_v48, %s2224_s26 }
0x250e   :  { %1636 = vrot.lane.b32.xlu0 %v1619_v7, %s2224_s26 }
0x257c   :  { %v1610_v9 = vpop.permute.xlu0 %1609 }
0x257d   :  { %v1612_v11 = vadd.f32 %v1610_v9, %v1602_v8 }
0x257f   :  { %2215 = vtanh.f32 %v1612_v11 }
0x2580   :  { %v1637_v14 = vpop.permute.xlu0 %1636 }
0x2581   :  { %2039 = vmatmul.mubr.msk.bf16.vlgmr.msra.gmra.mxu1 %vm499_vm7, %v1637_v14 }
0x2582   :  { %2042 = vmatprep.mubr.msk.bf16.mxu1 %vm2221_vm6, %v2220_v38 }
0x258c   :  { %v2216_v17 = vpop.eup %2215 }
0x258d   :  { %1615 = vrot.lane.b32.xlu1 %v2216_v17, %s2223_s5 }
0x2591   :  { %1638 = vrot.lane.b32.xlu1 %v1620_v18, %s2224_s26 }
0x25ff   :  { %v1616_v13 = vpop.permute.xlu1 %1615 }
0x2600   :  { %v1618_v37 = vmul.f32 %v2214_v5, %v1616_v13 }
0x2602   :  { %v1621_v19 = vpack.c.bf16 %v1618_v37, %v1546_v51 }
0x2603   :  { %v1639_v20 = vpop.permute.xlu1 %1638 }
0x2604   :  { %1640 = vrot.lane.b32.xlu0 %v1621_v19, %s2224_s26  ;;  %2043 = vmatmul.mubr.msk.bf16.gmra.mxu1 %vm499_vm7, %v1639_v20 }
0x2605   :  { %2046 = vmatprep.mubr.msk.bf16.mxu1 %vm2221_vm6, %v2220_v38 }
0x2641   :  { %v1697_v2 = vpop.f32.mrf.mxu1 }
0x2642   :  { %v1698_v46 = vadd.f32 %v1803_v21, %v1697_v2 }
0x2643   :  { %v2040_v4 = vpop.f32.mrf.mxu1 }
0x2644   :  { %1720 = vst.msk [vmem:[%s2709_s14] sm:$0xff] %vm1105_vm9, %v1698_v46 }
0x2645   :  { %v1700_v1 = vpop.f32.mrf.mxu1 }
0x2646   :  { %v1701_v3 = vadd.f32 %v1803_v21, %v1700_v1 }
0x2647   :  { %v2041_v12 = vpop.f32.mrf.mxu1 }
0x2648   :  { %1721 = vst.msk [vmem:[%s2709_s14 + $0x8] sm:$0xff] %vm1105_vm9, %v1701_v3 }
0x2676   :  { %v1641_v38 = vpop.permute.xlu0 %1640 }
0x2677   :  { %2047 = vmatmul.mubr.msk.bf16.gmra.mxu1 %vm499_vm7, %v1641_v38 }
0x26c4   :  { %v1705_v24 = vpop.f32.mrf.mxu1 }
0x26c5   :  { %v1706_v47 = vadd.f32 %v1803_v21, %v1705_v24 }
0x26c6   :  { %v2044_v25 = vpop.f32.mrf.mxu1 }
0x26c7   :  { %1722 = vst.msk [vmem:[%s2709_s14 + $0x10] sm:$0xff] %vm1105_vm9, %v1706_v47 }
0x26c8   :  { %v1708_v26 = vpop.f32.mrf.mxu1 }
0x26c9   :  { %v1709_v6 = vadd.f32 %v1803_v21, %v1708_v26 }
0x26ca   :  { %v2045_v27 = vpop.f32.mrf.mxu1 }
0x26cb   :  { %1723 = vst.msk [vmem:[%s2709_s14 + $0x18] sm:$0xff] %vm1105_vm9, %v1709_v6 }
0x2737   :  { %v1713_v58 = vpop.f32.mrf.mxu1 }
0x2738   :  { %v1714_v28 = vadd.f32 %v1803_v21, %v1713_v58 }
0x2739   :  { %v2048_v29 = vpop.f32.mrf.mxu1 }
0x273a   :  { %1724 = vst.msk [vmem:[%s2709_s14 + $0x20] sm:$0xff] %vm1105_vm9, %v1714_v28 }
0x273b   :  { %v1716_v30 = vpop.f32.mrf.mxu1 }
0x273c   :  { %v1717_v31 = vadd.f32 %v1803_v21, %v1716_v30 }
0x273d   :  { %v2049_v32 = vpop.f32.mrf.mxu1 }
0x273e   :  { %1725 = vst.msk [vmem:[%s2709_s14 + $0x28] sm:$0xff] %vm1105_vm9, %v1717_v31 }

</bundles_post_ra>
